<compile_context>
chip_gen: v5e
topology: v5e:2x2
jax: 0.10.0
libtpu: 0.0.40
codegen_flags: <defaults>
</compile_context>

<pallas_src>
import numpy as np
import jax
import jax.numpy as jnp
from jax import lax
from jax.experimental import pallas as pl
from jax.experimental.pallas import tpu as pltpu


def _round_up(v, m):
    return (v + m - 1) // m * m


# ----------------------------------------------------------------------------
# Host-side glue: exact replica of the module's tucker2decomposition (numpy).
# ----------------------------------------------------------------------------
def tucker2decomposition(weight_oihw, rc, rf):
    conv = weight_oihw.transpose((2, 3, 1, 0))          # (kh, kw, Cin, Cout)
    dim = conv.shape
    mode3 = np.transpose(conv, (2, 0, 1, 3)).reshape([dim[2], -1])
    u3, _, _ = np.linalg.svd(mode3)
    conv1_matrix = u3[:, 0:rc]
    mode4 = np.transpose(conv, (3, 0, 1, 2)).reshape([dim[3], -1])
    u4, _, _ = np.linalg.svd(mode4)
    conv3_matrix = u4[:, 0:rf]
    conv2 = np.dot(conv1_matrix.T, mode3).reshape(rc, dim[0], dim[1], dim[3])
    conv2 = conv2.transpose([1, 2, 0, 3])
    conv2 = np.transpose(conv2, (3, 0, 1, 2)).reshape([dim[3], -1])
    conv2 = np.dot(conv3_matrix.T, conv2).reshape(rf, dim[0], dim[1], rc)
    conv2 = conv2.transpose([1, 2, 3, 0])                # (kh, kw, rc, rf)
    conv1 = conv1_matrix.reshape([1, 1, dim[2], rc])     # (1, 1, Cin, rc)
    conv3 = conv3_matrix.T.reshape([1, 1, rf, dim[3]])   # (1, 1, rf, Cout)
    return conv1, conv2, conv3


def pack_tkd2_weights(c1, c2, c3):
    """Pack the decomposed weights into the kernel layout.

    Returns:
      w1  : (rc8, Cin)          conv1 weight, rc zero-padded to a multiple of 8.
      w23 : (Cout, KH*KW*rc8)   conv2 weight with conv3 folded in, 2-D and
                                lane-dense, K ordered as (kh, kw, r).
    """
    Cin, rc = c1.shape[2], c1.shape[3]
    KH, KW, _, rf = c2.shape
    Cout = c3.shape[3]
    rc8 = _round_up(rc, 8)

    w1 = np.zeros((rc8, Cin), np.float32)
    w1[:rc, :] = c1.reshape(Cin, rc).T

    # TODO(synk): at scale on v5e (rf << Cout) keep conv3 unfolded (tap dot at
    # width rf + one final (Cout, rf) matmul) to roughly halve MXU MACs.
    w23f = np.einsum('hwrf,fo->hwor', c2, c3.reshape(rf, Cout))    # (KH,KW,Cout,rc)
    w23p = np.zeros((KH, KW, Cout, rc8), np.float32)
    w23p[..., :rc] = w23f
    w23 = np.transpose(w23p, (2, 0, 1, 3)).reshape(Cout, KH * KW * rc8)
    return jnp.asarray(w1), jnp.asarray(w23)


# ----------------------------------------------------------------------------
# Pallas kernel: fused conv1 (1x1) -> conv2 (KHxKW) [conv3 folded in weights].
# ----------------------------------------------------------------------------
def make_tkd2_forward(N, H, W, Cin, Cout, KH, KW, stride, padding, rc,
                      images_per_step=1, dtype=jnp.float32):
    SH, SW = stride
    PH, PW = padding
    Hp, Wp = H + 2 * PH, W + 2 * PW
    Wrow = _round_up(Wp, 128)       # one padded image row per 128-lane tile(s)
    Ho_d = Hp - KH + 1              # dense (stride-1) output rows
    Ho = (Hp - KH) // SH + 1
    Wo = (Wp - KW) // SW + 1
    FL_IN = (Hp + 1) * Wrow         # flat input/x1 extent (+1 zero slack row)
    FL_SH = Hp * Wrow               # flat extent of each kw-shifted variant
    LO = Ho_d * Wrow                # flat dense-output extent (128-multiple)
    rc8 = _round_up(rc, 8)
    KK = KH * KW * rc8              # fused contraction length
    NB = images_per_step
    assert N % NB == 0, (N, NB)

    def kernel(x_ref, w1_ref, w23_ref, o_ref):
        # x_ref:   (NB, Cin, FL_IN)  padded NCHW images, one row per lane tile
        # w1_ref:  (rc8, Cin)        conv1 weight (rc padded to 8-row tile)
        # w23_ref: (Cout, KK)        conv2 weight, conv3 folded, K=(kh,kw,r)
        # o_ref:   (NB, Cout, LO)    dense conv output, flat spatial, lane-dense
        w1 = w1_ref[...]
        w23 = w23_ref[...]
        # TODO(synk): at production sizes on v6e/v7x cast x/x1 to bf16 for the
        # MXU (pad the tiny channel dims to the 16-row bf16 sublane tile first).
        for n in range(NB):         # static unroll: amortizes grid-step overhead
            x = x_ref[n]                                             # (Cin, FL_IN)
            # conv1: single matmul over the whole padded image.
            x1 = jnp.dot(w1, x, preferred_element_type=jnp.float32)  # (rc8, FL_IN)
            # KW lane-shifted copies of x1 (the only cross-lane moves), reused
            # across all kh taps.  kw=0 is an aligned (free) slice.
            shifted = [x1[:, kw:kw + FL_SH] for kw in range(KW)]
            # Stack the KH*KW tap windows along sublanes: every piece is a full
            # 8-row sublane tile and every kh offset (kh*Wrow) is lane-tile
            # aligned -> pure aligned tile stacking.
            xs = jnp.concatenate(
                [shifted[kw][:, kh * Wrow:kh * Wrow + LO]
                 for kh in range(KH) for kw in range(KW)], axis=0)   # (KK, LO)
            # conv2 (+ folded conv3): ONE fused dot, tap axis folded into K.
            o_ref[n] = jnp.dot(w23, xs,
                               preferred_element_type=jnp.float32
                               ).astype(o_ref.dtype)

    call = pl.pallas_call(
        kernel,
        out_shape=jax.ShapeDtypeStruct((N, Cout, LO), dtype),
        grid_spec=pltpu.PrefetchScalarGridSpec(
            num_scalar_prefetch=0,
            grid=(N // NB,),
            in_specs=[
                pl.BlockSpec((NB, Cin, FL_IN), lambda i: (i, 0, 0)),
                pl.BlockSpec((rc8, Cin), lambda i: (0, 0)),
                pl.BlockSpec((Cout, KK), lambda i: (0, 0)),
            ],
            out_specs=pl.BlockSpec((NB, Cout, LO), lambda i: (i, 0, 0)),
        ),
        # Whole-image blocks easily fit default scoped VMEM at demo shapes.
        # TODO(synk): at production H,W,Cin add a halo'd row-tile grid axis and
        # set vmem_limit_bytes explicitly (v7x has only 64 MiB physical VMEM);
        # on v5e consider pipeline_mode=pl.Buffered(3) if DMA waits are exposed.
        compiler_params=pltpu.CompilerParams(
            dimension_semantics=("parallel",)),
    )

    def forward(x_nchw, w1, w23):
        # Zero-pad each row out to Wrow lanes, each image to Hp(+1 slack) rows,
        # then flatten (H, W) onto the lane axis.  NCHW in, NCHW out.
        x_pad = jnp.pad(x_nchw,
                        ((0, 0), (0, 0), (PH, PH + 1), (PW, Wrow - W - PW)))
        x_flat = x_pad.reshape(N, Cin, FL_IN)
        y_flat = call(x_flat, w1, w23)                    # (N, Cout, LO)
        y = y_flat.reshape(N, Cout, Ho_d, Wrow)
        # Crop padding/junk columns; decimate rows/cols for stride > 1 (exact,
        # over-computes by SH*SW).
        # TODO(synk): dedicated strided-tap path for stride > 1 at scale.
        return y[:, :, 0:(Ho - 1) * SH + 1:SH, 0:(Wo - 1) * SW + 1:SW]

    return forward


if __name__ == "__main__":
    # Small shapes consistent with the module's forward.
    N, Cin, H, W = 2, 8, 16, 16
    Cout, KH, KW = 16, 3, 3
    stride, padding = (1, 1), (1, 1)
    rc, rf = 4, 6

    key = jax.random.PRNGKey(0)
    k_x, k_w = jax.random.split(key)
    x = jax.random.normal(k_x, (N, Cin, H, W), jnp.float32)
    # Synthetic "original" conv weight (OIHW), decomposed exactly like the module.
    w_orig = np.asarray(jax.random.normal(k_w, (Cout, Cin, KH, KW), jnp.float32))
    c1, c2, c3 = tucker2decomposition(w_orig, rc, rf)
    w1, w23 = pack_tkd2_weights(c1, c2, c3)

    fwd = make_tkd2_forward(N, H, W, Cin, Cout, KH, KW, stride, padding, rc,
                            images_per_step=2)
    out = jax.block_until_ready(fwd(x, w1, w23))

    # Reference: the module's three convolutions via lax (NCHW / OIHW, like PyTorch).
    w1_oihw = jnp.asarray(c1.transpose(3, 2, 0, 1), jnp.float32)
    w2_oihw = jnp.asarray(c2.transpose(3, 2, 0, 1), jnp.float32)
    w3_oihw = jnp.asarray(c3.transpose(3, 2, 0, 1), jnp.float32)
    dn = ("NCHW", "OIHW", "NCHW")
    ref = lax.conv_general_dilated(x, w1_oihw, (1, 1), "VALID",
                                   dimension_numbers=dn)
    ref = lax.conv_general_dilated(ref, w2_oihw, stride,
                                   [(padding[0], padding[0]),
                                    (padding[1], padding[1])],
                                   dimension_numbers=dn)
    ref = lax.conv_general_dilated(ref, w3_oihw, (1, 1), "VALID",
                                   dimension_numbers=dn)

    assert out.shape == ref.shape, (out.shape, ref.shape)
    assert np.allclose(np.asarray(out), np.asarray(ref), rtol=1e-4, atol=1e-4)
    print("KERNEL_OK")
</pallas_src>

<mosaic_0001>
module attributes {stable_mosaic.version = 11 : i64} {
  func.func @kernel(%arg0: i32, %arg1: memref<2x8x2432xf32, #tpu.memory_space<vmem>>, %arg2: memref<8x8xf32, #tpu.memory_space<vmem>>, %arg3: memref<16x72xf32, #tpu.memory_space<vmem>>, %arg4: memref<2x16x2048xf32, #tpu.memory_space<vmem>>) attributes {dimension_semantics = [#tpu.dimension_semantics<parallel>], iteration_bounds = array<i64: 1>, scalar_prefetch = 0 : i64, scratch_operands = 0 : i64, tpu.core_type = #tpu.core_type<tc>, window_params = [{transform_indices = @transform_0, window_bounds = array<i64: 2, 8, 2432>}, {pipeline_mode = #tpu.pipeline_mode<synchronous>, transform_indices = @transform_1, window_bounds = array<i64: 8, 8>}, {pipeline_mode = #tpu.pipeline_mode<synchronous>, transform_indices = @transform_2, window_bounds = array<i64: 16, 72>}, {transform_indices = @transform_3, window_bounds = array<i64: 2, 16, 2048>}]} {
    %c0 = arith.constant 0 : index
    %c0_0 = arith.constant 0 : index
    %0 = vector.load %arg2[%c0, %c0_0] : memref<8x8xf32, #tpu.memory_space<vmem>>, vector<8x8xf32>
    %c0_1 = arith.constant 0 : index
    %c0_2 = arith.constant 0 : index
    %1 = vector.load %arg3[%c0_1, %c0_2] : memref<16x72xf32, #tpu.memory_space<vmem>>, vector<16x72xf32>
    %c0_3 = arith.constant 0 : index
    %c0_4 = arith.constant 0 : index
    %c0_5 = arith.constant 0 : index
    %2 = vector.load %arg1[%c0_3, %c0_4, %c0_5] : memref<2x8x2432xf32, #tpu.memory_space<vmem>>, vector<1x8x2432xf32>
    %3 = vector.shape_cast %2 : vector<1x8x2432xf32> to vector<8x2432xf32>
    %cst = arith.constant dense<0.000000e+00> : vector<8x2432xf32>
    %4 = tpu.matmul %0, %3, %cst {dimension_numbers = #tpu.dot_dimension_numbers<[1], [0], [0], [1], [0, 0, 1, 1], [], []>} : vector<8x8xf32>, vector<8x2432xf32>, vector<8x2432xf32> -> vector<8x2432xf32>
    %5 = vector.extract_strided_slice %4 {offsets = [0, 0], sizes = [8, 2304], strides = [1, 1]} : vector<8x2432xf32> to vector<8x2304xf32>
    %6 = vector.extract_strided_slice %4 {offsets = [0, 1], sizes = [8, 2304], strides = [1, 1]} : vector<8x2432xf32> to vector<8x2304xf32>
    %7 = vector.extract_strided_slice %4 {offsets = [0, 2], sizes = [8, 2304], strides = [1, 1]} : vector<8x2432xf32> to vector<8x2304xf32>
    %8 = vector.extract_strided_slice %5 {offsets = [0, 0], sizes = [8, 2048], strides = [1, 1]} : vector<8x2304xf32> to vector<8x2048xf32>
    %9 = vector.extract_strided_slice %6 {offsets = [0, 0], sizes = [8, 2048], strides = [1, 1]} : vector<8x2304xf32> to vector<8x2048xf32>
    %10 = vector.extract_strided_slice %7 {offsets = [0, 0], sizes = [8, 2048], strides = [1, 1]} : vector<8x2304xf32> to vector<8x2048xf32>
    %11 = vector.extract_strided_slice %5 {offsets = [0, 128], sizes = [8, 2048], strides = [1, 1]} : vector<8x2304xf32> to vector<8x2048xf32>
    %12 = vector.extract_strided_slice %6 {offsets = [0, 128], sizes = [8, 2048], strides = [1, 1]} : vector<8x2304xf32> to vector<8x2048xf32>
    %13 = vector.extract_strided_slice %7 {offsets = [0, 128], sizes = [8, 2048], strides = [1, 1]} : vector<8x2304xf32> to vector<8x2048xf32>
    %14 = vector.extract_strided_slice %5 {offsets = [0, 256], sizes = [8, 2048], strides = [1, 1]} : vector<8x2304xf32> to vector<8x2048xf32>
    %15 = vector.extract_strided_slice %6 {offsets = [0, 256], sizes = [8, 2048], strides = [1, 1]} : vector<8x2304xf32> to vector<8x2048xf32>
    %16 = vector.extract_strided_slice %7 {offsets = [0, 256], sizes = [8, 2048], strides = [1, 1]} : vector<8x2304xf32> to vector<8x2048xf32>
    %17 = tpu.concatenate %8, %9, %10, %11, %12, %13, %14, %15, %16 in 0 : vector<8x2048xf32>, vector<8x2048xf32>, vector<8x2048xf32>, vector<8x2048xf32>, vector<8x2048xf32>, vector<8x2048xf32>, vector<8x2048xf32>, vector<8x2048xf32>, vector<8x2048xf32> -> vector<72x2048xf32>
    %cst_6 = arith.constant dense<0.000000e+00> : vector<16x2048xf32>
    %18 = tpu.matmul %1, %17, %cst_6 {dimension_numbers = #tpu.dot_dimension_numbers<[1], [0], [0], [1], [0, 0, 1, 1], [], []>} : vector<16x72xf32>, vector<72x2048xf32>, vector<16x2048xf32> -> vector<16x2048xf32>
    %c0_7 = arith.constant 0 : index
    %c0_8 = arith.constant 0 : index
    %c0_9 = arith.constant 0 : index
    %19 = vector.load %arg4[%c0_7, %c0_8, %c0_9] : memref<2x16x2048xf32, #tpu.memory_space<vmem>>, vector<1x16x2048xf32>
    %20 = vector.shape_cast %19 : vector<1x16x2048xf32> to vector<16x2048xf32>
    %21 = vector.shape_cast %18 : vector<16x2048xf32> to vector<1x16x2048xf32>
    tpu.vector_store %arg4[%c0_7, %c0_8, %c0_9], %21 {strides = array<i32>} : memref<2x16x2048xf32, #tpu.memory_space<vmem>>, vector<1x16x2048xf32>,
    %c1 = arith.constant 1 : index
    %c0_10 = arith.constant 0 : index
    %c0_11 = arith.constant 0 : index
    %22 = vector.load %arg1[%c1, %c0_10, %c0_11] : memref<2x8x2432xf32, #tpu.memory_space<vmem>>, vector<1x8x2432xf32>
    %23 = vector.shape_cast %22 : vector<1x8x2432xf32> to vector<8x2432xf32>
    %cst_12 = arith.constant dense<0.000000e+00> : vector<8x2432xf32>
    %24 = tpu.matmul %0, %23, %cst_12 {dimension_numbers = #tpu.dot_dimension_numbers<[1], [0], [0], [1], [0, 0, 1, 1], [], []>} : vector<8x8xf32>, vector<8x2432xf32>, vector<8x2432xf32> -> vector<8x2432xf32>
    %25 = vector.extract_strided_slice %24 {offsets = [0, 0], sizes = [8, 2304], strides = [1, 1]} : vector<8x2432xf32> to vector<8x2304xf32>
    %26 = vector.extract_strided_slice %24 {offsets = [0, 1], sizes = [8, 2304], strides = [1, 1]} : vector<8x2432xf32> to vector<8x2304xf32>
    %27 = vector.extract_strided_slice %24 {offsets = [0, 2], sizes = [8, 2304], strides = [1, 1]} : vector<8x2432xf32> to vector<8x2304xf32>
    %28 = vector.extract_strided_slice %25 {offsets = [0, 0], sizes = [8, 2048], strides = [1, 1]} : vector<8x2304xf32> to vector<8x2048xf32>
    %29 = vector.extract_strided_slice %26 {offsets = [0, 0], sizes = [8, 2048], strides = [1, 1]} : vector<8x2304xf32> to vector<8x2048xf32>
    %30 = vector.extract_strided_slice %27 {offsets = [0, 0], sizes = [8, 2048], strides = [1, 1]} : vector<8x2304xf32> to vector<8x2048xf32>
    %31 = vector.extract_strided_slice %25 {offsets = [0, 128], sizes = [8, 2048], strides = [1, 1]} : vector<8x2304xf32> to vector<8x2048xf32>
    %32 = vector.extract_strided_slice %26 {offsets = [0, 128], sizes = [8, 2048], strides = [1, 1]} : vector<8x2304xf32> to vector<8x2048xf32>
    %33 = vector.extract_strided_slice %27 {offsets = [0, 128], sizes = [8, 2048], strides = [1, 1]} : vector<8x2304xf32> to vector<8x2048xf32>
    %34 = vector.extract_strided_slice %25 {offsets = [0, 256], sizes = [8, 2048], strides = [1, 1]} : vector<8x2304xf32> to vector<8x2048xf32>
    %35 = vector.extract_strided_slice %26 {offsets = [0, 256], sizes = [8, 2048], strides = [1, 1]} : vector<8x2304xf32> to vector<8x2048xf32>
    %36 = vector.extract_strided_slice %27 {offsets = [0, 256], sizes = [8, 2048], strides = [1, 1]} : vector<8x2304xf32> to vector<8x2048xf32>
    %37 = tpu.concatenate %28, %29, %30, %31, %32, %33, %34, %35, %36 in 0 : vector<8x2048xf32>, vector<8x2048xf32>, vector<8x2048xf32>, vector<8x2048xf32>, vector<8x2048xf32>, vector<8x2048xf32>, vector<8x2048xf32>, vector<8x2048xf32>, vector<8x2048xf32> -> vector<72x2048xf32>
    %cst_13 = arith.constant dense<0.000000e+00> : vector<16x2048xf32>
    %38 = tpu.matmul %1, %37, %cst_13 {dimension_numbers = #tpu.dot_dimension_numbers<[1], [0], [0], [1], [0, 0, 1, 1], [], []>} : vector<16x72xf32>, vector<72x2048xf32>, vector<16x2048xf32> -> vector<16x2048xf32>
    %c1_14 = arith.constant 1 : index
    %c0_15 = arith.constant 0 : index
    %c0_16 = arith.constant 0 : index
    %39 = vector.load %arg4[%c1_14, %c0_15, %c0_16] : memref<2x16x2048xf32, #tpu.memory_space<vmem>>, vector<1x16x2048xf32>
    %40 = vector.shape_cast %39 : vector<1x16x2048xf32> to vector<16x2048xf32>
    %41 = vector.shape_cast %38 : vector<16x2048xf32> to vector<1x16x2048xf32>
    tpu.vector_store %arg4[%c1_14, %c0_15, %c0_16], %41 {strides = array<i32>} : memref<2x16x2048xf32, #tpu.memory_space<vmem>>, vector<1x16x2048xf32>,
    return
  }
  func.func @transform_0(%arg0: i32) -> (i32, i32, i32) {
    %c0_i32 = arith.constant 0 : i32
    %c0_i32_0 = arith.constant 0 : i32
    %c0_i32_1 = arith.constant 0 : i32
    return %arg0, %c0_i32, %c0_i32_0 : i32, i32, i32
  }
  func.func @transform_1(%arg0: i32) -> (i32, i32) {
    %c0_i32 = arith.constant 0 : i32
    %c0_i32_0 = arith.constant 0 : i32
    %c0_i32_1 = arith.constant 0 : i32
    return %c0_i32, %c0_i32_0 : i32, i32
  }
  func.func @transform_2(%arg0: i32) -> (i32, i32) {
    %c0_i32 = arith.constant 0 : i32
    %c0_i32_0 = arith.constant 0 : i32
    %c0_i32_1 = arith.constant 0 : i32
    return %c0_i32, %c0_i32_0 : i32, i32
  }
  func.func @transform_3(%arg0: i32) -> (i32, i32, i32) {
    %c0_i32 = arith.constant 0 : i32
    %c0_i32_0 = arith.constant 0 : i32
    %c0_i32_1 = arith.constant 0 : i32
    return %arg0, %c0_i32, %c0_i32_0 : i32, i32, i32
  }
}

</mosaic_0001>

<bundles_post_ra>
// kernel: tpu_custom_call.1
= control target key start
LH: loop header
LB: loop body
LE: loop exit
PB: predicated region body
PF: predicated region fallthrough
CT: control target
= control target key end

     0   :  { %8 = vsyncpa [#allocation3], 0  ;;  %s3298_s0 = inlined_call_operand.hbm [shape: f32[2,8,2432], index: 0, kind: input, shape index: {}]   ;;  %s3299_s1 = inlined_call_operand.hbm [shape: f32[8,8], index: 1, kind: input, shape index: {}]   ;;  %s3300_s2 = inlined_call_operand.hbm [shape: f32[16,72], index: 2, kind: input, shape index: {}]   ;;  %s3301_s3 = inlined_call_operand.hbm [shape: f32[2,16,2048], index: 3, kind: output, shape index: {}]  }
   0x1   :  { %9 = vsyncpa [#allocation6], 0  ;;  %s29_s14 = sshll.u32 %s3299_s1, 4  ;;  %s30_s14 = int_to_ptr.hbm [resolvable:$true] %s29_s14 }
   0x2   :  { %10 = vsyncpa [#allocation4], 0  ;;  %s2427_s15 = smov [#allocation5]   ;;  %s15_s19 = sshll.u32 %s3298_s0, 4  ;;  %s16_s19 = int_to_ptr.hbm [resolvable:$true] %s15_s19 }
   0x3   :  { %s31_s16 = sshll.u32 %s2427_s15, 4  ;;  %s2428_s20 = smov [#allocation2]   ;;  %s32_s16 = int_to_ptr.vmem [resolvable:$true] %s31_s16 }
   0x4   :  { %34 = dma.hbm_to_vmem [thread:$0]  %s30_s14, 128, %s32_s16, [#allocation6]  }
   0x5   :  { %s17_s21 = sshll.u32 %s2428_s20, 4  ;;  %s2429_s22 = smov 2432   ;;  %s18_s21 = int_to_ptr.vmem [resolvable:$true] %s17_s21 }
   0x6   :  { %s2430_s23 = smov 152   ;;  %s39_s1 = sshll.u32 %s3300_s2, 4  ;;  %s40_s1 = int_to_ptr.hbm [resolvable:$true] %s39_s1 }
   0x7   :  { %23 = dma.hbm_to_vmem [thread:$0]  %s16_s19, 4864, %s18_s21, [#allocation3], %s2429_s22, %s2429_s22, %s2430_s23  }
   0x8   :  { %s2431_s26 = smov [#allocation7]   ;;  %s2432_s28 = smov 128  }
   0x9   :  { %s41_s27 = sshll.u32 %s2431_s26, 4  ;;  %s2433_s29 = smov 8   ;;  %s42_s27 = int_to_ptr.vmem [resolvable:$true] %s41_s27 }
   0xa   :  { %47 = dma.hbm_to_vmem [thread:$0]  %s40_s1, 256, %s42_s27, [#allocation6], %s2432_s28, %s2432_s28, %s2433_s29  }
   0xb   :  { %2421 = dma.done.wait [#allocation3], 4864  }
   0xc   :  { %2422 = vsyncadd [#allocation3], 4294962432 }
   0xd   :  { %2423 = dma.done.wait [#allocation6], 384  }
   0xe   :  { %2424 = vsyncadd [#allocation6], 4294966912  ;;  %vm82_vm0 = vcmask 64512   ;;  %v64_v0 = vld [vmem:[#allocation2 + $0x8] sm:$0xff]  ;;  %v65_v1 = vld [vmem:[#allocation2 + $0x10] sm:$0xff]  ;;  %s2434_s0 = smov 126  }
   0xf   :  { %v66_v2 = vld [vmem:[#allocation2 + $0x18] sm:$0xff]  ;;  %121 = vmatpush.msra.mxu1 %v64_v0  ;;  %141 = vmatpush.msra.mxu2 %v65_v1  ;;  %v2469_v3 = vld [vmem:[#allocation5] sm:$0xff]  ;;  %v68_v4 = vld [vmem:[#allocation2 + $0x28] sm:$0xff]  ;;  %s2435_s2 = smov 127   ;;  %vm584_vm1 = vcmask 1031168   ;;  %vm517_vm2 = vcmask 1039360  }
  0x10   :  { %v69_v5 = vld [vmem:[#allocation2 + $0x30] sm:$0xff]  ;;  %161 = vmatpush.msra.mxu3 %v66_v2  ;;  %2031 = vmatmul.msk.f32.vlgmr.msra.gmra.mxu1 %vm82_vm0, %v2469_v3  ;;  %v63_v6 = vld [vmem:[#allocation2] sm:$0xff]  ;;  %v70_v7 = vld [vmem:[#allocation2 + $0x38] sm:$0xff]  ;;  %vm635_vm3 = vcmask 588800   ;;  %s2436_s30 = smov [#allocation8]   ;;  %s2016_s7 = sshll.u32 %s3301_s3, 4  ;;  %s2017_s7 = int_to_ptr.hbm [resolvable:$true] %s2016_s7 }
  0x11   :  { %2032 = vmatmul.msk.f32.vlgmr.msra.gmra.mxu2 %vm82_vm0, %v2469_v3  ;;  %2033 = vmatmul.msk.f32.vlgmr.msra.gmra.mxu3 %vm82_vm0, %v2469_v3  ;;  %v73_v8 = vld [vmem:[#allocation2 + $0x50] sm:$0xff]  ;;  %v67_v9 = vld [vmem:[#allocation2 + $0x20] sm:$0xff]  ;;  %v74_v10 = vld [vmem:[#allocation2 + $0x58] sm:$0xff]  ;;  %s2014_s4 = sshll.u32 %s2436_s30, 4  ;;  %s2437_s8 = smov 2048   ;;  %s2015_s4 = int_to_ptr.vmem [resolvable:$true] %s2014_s4 }
  0x12   :  { %201 = vmatpush.msrb.mxu1 %v68_v4  ;;  %221 = vmatpush.msrb.mxu2 %v69_v5  ;;  %v72_v11 = vld [vmem:[#allocation2 + $0x48] sm:$0xff]  ;;  %v71_v12 = vld [vmem:[#allocation2 + $0x40] sm:$0xff]  ;;  %v77_v13 = vld [vmem:[#allocation2 + $0x70] sm:$0xff] }
  0x13   :  { %101 = vmatpush.msra.mxu0 %v63_v6  ;;  %241 = vmatpush.msrb.mxu3 %v70_v7  ;;  %v76_v14 = vld [vmem:[#allocation2 + $0x68] sm:$0xff]  ;;  %v78_v15 = vld [vmem:[#allocation2 + $0x78] sm:$0xff]  ;;  %v75_v16 = vld [vmem:[#allocation2 + $0x60] sm:$0xff] }
  0x14   :  { %2030 = vmatmul.msk.f32.vlgmr.msra.gmra.mxu0 %vm82_vm0, %v2469_v3  ;;  %301 = vmatpush.msra.mxu2 %v73_v8  ;;  %v81_v17 = vld [vmem:[#allocation2 + $0x90] sm:$0xff]  ;;  %v80_v18 = vld [vmem:[#allocation2 + $0x88] sm:$0xff]  ;;  %v79_v19 = vld [vmem:[#allocation2 + $0x80] sm:$0xff] }
  0x15   :  { %181 = vmatpush.msrb.mxu0 %v67_v9  ;;  %321 = vmatpush.msra.mxu3 %v74_v10 }
  0x16   :  { %281 = vmatpush.msra.mxu1 %v72_v11 }
  0x17   :  { %261 = vmatpush.msra.mxu0 %v71_v12 }
  0x18   :  { %2035 = vmatmul.msk.f32.vlgmr.msrb.gmra.mxu1 %vm82_vm0, %v2469_v3 }
  0x19   :  { %2036 = vmatmul.msk.f32.vlgmr.msrb.gmra.mxu2 %vm82_vm0, %v2469_v3  ;;  %2037 = vmatmul.msk.f32.vlgmr.msrb.gmra.mxu3 %vm82_vm0, %v2469_v3 }
  0x1a   :  { %381 = vmatpush.msrb.mxu2 %v77_v13  ;;  %361 = vmatpush.msrb.mxu1 %v76_v14 }
  0x1b   :  { %401 = vmatpush.msrb.mxu3 %v78_v15 }
  0x1c   :  { %2034 = vmatmul.msk.f32.vlgmr.msrb.gmra.mxu0 %vm82_vm0, %v2469_v3 }
  0x1d   :  { %341 = vmatpush.msrb.mxu0 %v75_v16 }
  0x20   :  { %2039 = vmatmul.msk.f32.vlgmr.msra.gmra.mxu1 %vm82_vm0, %v2469_v3 }
  0x21   :  { %2040 = vmatmul.msk.f32.vlgmr.msra.gmra.mxu2 %vm82_vm0, %v2469_v3  ;;  %2041 = vmatmul.msk.f32.vlgmr.msra.gmra.mxu3 %vm82_vm0, %v2469_v3 }
  0x22   :  { %461 = vmatpush.msra.mxu2 %v81_v17  ;;  %441 = vmatpush.msra.mxu1 %v80_v18 }
  0x24   :  { %2038 = vmatmul.msk.f32.vlgmr.msra.gmra.mxu0 %vm82_vm0, %v2469_v3 }
  0x25   :  { %421 = vmatpush.msra.mxu0 %v79_v19 }
  0x28   :  { %2043 = vmatmul.msk.f32.vlgmr.msrb.gmra.mxu1 %vm82_vm0, %v2469_v3 }
  0x29   :  { %2044 = vmatmul.msk.f32.vlgmr.msrb.gmra.mxu2 %vm82_vm0, %v2469_v3  ;;  %2045 = vmatmul.msk.f32.vlgmr.msrb.gmra.mxu3 %vm82_vm0, %v2469_v3 }
  0x2c   :  { %2042 = vmatmul.msk.f32.vlgmr.msrb.gmra.mxu0 %vm82_vm0, %v2469_v3 }
  0x30   :  { %2047 = vmatmul.msk.f32.vlgmr.msra.gmra.mxu1 %vm82_vm0, %v2469_v3 }
  0x31   :  { %2048 = vmatmul.msk.f32.vlgmr.msra.gmra.mxu2 %vm82_vm0, %v2469_v3 }
  0x34   :  { %2046 = vmatmul.msk.f32.vlgmr.msra.gmra.mxu0 %vm82_vm0, %v2469_v3 }
  0x8d   :  { %v2509_v20 = vpop.f32.mrf.mxu1 }
  0x91   :  { %v2521_v26 = vpop.f32.mrf.mxu0 }
  0x94   :  { %v2511_v21 = vpop.f32.mrf.mxu2  ;;  %v2513_v22 = vpop.f32.mrf.mxu3 }
  0x95   :  { %v2515_v23 = vpop.f32.mrf.mxu1  ;;  %v2143_v24 = vpack.i.bf16 %v2513_v22, %v2511_v21 }
  0x96   :  { %v2153_v25 = vpack.i.bf16 %v2515_v23, %v2509_v20 }
  0x97   :  { %2144 = vrot.lane.b32.xlu0 %v2143_v24, %s2434_s0 }
  0x98   :  { %2154 = vrot.lane.b32.xlu1 %v2153_v25, %s2434_s0 }
  0x99   :  { %v2532_v29 = vpop.f32.mrf.mxu0 }
  0x9c   :  { %v2525_v27 = vpop.f32.mrf.mxu2  ;;  %v2534_v30 = vpop.f32.mrf.mxu3 }
  0x9d   :  { %v2163_v28 = vpack.i.bf16 %v2521_v26, %v2525_v27  ;;  %v2173_v31 = vpack.i.bf16 %v2534_v30, %v2532_v29  ;;  %v2538_v32 = vpop.f32.mrf.mxu1 }
  0x9f   :  { %2149 = vrot.lane.b32.xlu0 %v2143_v24, %s2435_s2  ;;  %2164 = vrot.lane.b32.xlu2 %v2163_v28, %s2434_s0 }
  0xa0   :  { %2159 = vrot.lane.b32.xlu1 %v2153_v25, %s2435_s2 }
  0xa1   :  { %v2545_v34 = vpop.f32.mrf.mxu0 }
  0xa4   :  { %v2540_v33 = vpop.f32.mrf.mxu2  ;;  %v2547_v35 = vpop.f32.mrf.mxu3 }
  0xa5   :  { %v2188_v36 = vpack.i.bf16 %v2540_v33, %v2538_v32  ;;  %v2193_v37 = vpack.i.bf16 %v2547_v35, %v2545_v34  ;;  %v2556_v38 = vpop.f32.mrf.mxu1 }
  0xa7   :  { %2169 = vrot.lane.b32.xlu2 %v2163_v28, %s2435_s2  ;;  %2174 = vrot.lane.b32.xlu0 %v2173_v31, %s2434_s0 }
  0xa8   :  { %2179 = vrot.lane.b32.xlu1 %v2173_v31, %s2435_s2 }
  0xa9   :  { %v2567_v42 = vpop.f32.mrf.mxu0 }
  0xac   :  { %v2558_v39 = vpop.f32.mrf.mxu2  ;;  %v2565_v41 = vpop.f32.mrf.mxu3 }
  0xad   :  { %v2203_v40 = vpack.i.bf16 %v2558_v39, %v2556_v38  ;;  %v2569_v43 = vpop.f32.mrf.mxu1  ;;  %v2218_v45 = vpack.i.bf16 %v2565_v41, %v2567_v42 }
  0xaf   :  { %2189 = vrot.lane.b32.xlu0 %v2188_v36, %s2435_s2  ;;  %2184 = vrot.lane.b32.xlu2 %v2188_v36, %s2434_s0 }
  0xb0   :  { %2194 = vrot.lane.b32.xlu1 %v2193_v37, %s2434_s0 }
  0xb1   :  { %v2577_v47 = vpop.f32.mrf.mxu0 }
  0xb4   :  { %v463_v44 = vpop.f32.mrf.mxu2 }
  0xb5   :  { %v2223_v46 = vpack.i.bf16 %v463_v44, %v2569_v43 }
  0xb7   :  { %2204 = vrot.lane.b32.xlu0 %v2203_v40, %s2434_s0  ;;  %2199 = vrot.lane.b32.xlu2 %v2193_v37, %s2435_s2 }
  0xb8   :  { %2209 = vrot.lane.b32.xlu1 %v2203_v40, %s2435_s2  ;;  %v2651_v40 = vld [vmem:[#allocation7] sm:$0xff] }
  0xbf   :  { %2219 = vrot.lane.b32.xlu0 %v2218_v45, %s2435_s2  ;;  %2214 = vrot.lane.b32.xlu2 %v2218_v45, %s2434_s0 }
  0xc0   :  { %2224 = vrot.lane.b32.xlu1 %v2223_v46, %s2434_s0 }
  0xc7   :  { %582 = vrot.lane.b32.xlu0 %v2577_v47, %s2434_s0  ;;  %2229 = vrot.lane.b32.xlu2 %v2223_v46, %s2435_s2 }
  0xc8   :  { %515 = vrot.lane.b32.xlu1 %v2577_v47, %s2435_s2 }
  0xf9   :  { %v2584_v48 = vpop.permute.xlu2 %2164 }
  0xfa   :  { %v2166_v53 = vunpack.i.l.bf16 %v2584_v48  ;;  %v2167_v11 = vunpack.i.h.bf16 %v2584_v48 }
 0x101   :  { %v2595_v57 = vpop.permute.xlu2 %2169 }
 0x102   :  { %v2171_v62 = vunpack.i.l.bf16 %v2595_v57  ;;  %v2172_v16 = vunpack.i.h.bf16 %v2595_v57 }
 0x109   :  { %v2145_v49 = vpop.permute.xlu0 %2144  ;;  %v2635_v24 = vpop.permute.xlu2 %2184 }
 0x10a   :  { %v2147_v50 = vunpack.i.h.bf16 %v2145_v49  ;;  %v2146_v51 = vunpack.i.l.bf16 %v2145_v49  ;;  %v2155_v52 = vpop.permute.xlu1 %2154  ;;  %v2187_v36 = vunpack.i.h.bf16 %v2635_v24  ;;  %v2186_v37 = vunpack.i.l.bf16 %v2635_v24 }
 0x10b   :  { %v2157_v54 = vunpack.i.h.bf16 %v2155_v52  ;;  %v2156_v0 = vunpack.i.l.bf16 %v2155_v52 }
 0x10c   :  { %v2588_v55 = vsel %vm584_vm1, %v2146_v51, %v2147_v50  ;;  %v2670_v48 = vsel %vm584_vm1, %v2186_v37, %v2187_v36 }
 0x10d   :  { %649 = vmatpush.msra.mxu3 %v2588_v55  ;;  %v2592_v56 = vsel %vm584_vm1, %v2157_v54, %v2166_v53  ;;  %v586_v5 = vsel %vm584_vm1, %v2156_v0, %v2146_v51  ;;  %v585_v17 = vsel %vm584_vm1, %v2167_v11, %v2156_v0 }
 0x10e   :  { %718 = vmatpush.msrb.mxu2 %v2592_v56 }
 0x111   :  { %v2150_v58 = vpop.permute.xlu0 %2149 }
 0x112   :  { %v2152_v59 = vunpack.i.h.bf16 %v2150_v58  ;;  %v2151_v60 = vunpack.i.l.bf16 %v2150_v58  ;;  %v2160_v61 = vpop.permute.xlu1 %2159 }
 0x113   :  { %v2162_v63 = vunpack.i.h.bf16 %v2160_v61  ;;  %v2161_v4 = vunpack.i.l.bf16 %v2160_v61 }
 0x114   :  { %v2599_v1 = vsel %vm517_vm2, %v2151_v60, %v2152_v59 }
 0x115   :  { %650 = vmatpush.msra.mxu3 %v2599_v1  ;;  %v2603_v2 = vsel %vm517_vm2, %v2162_v63, %v2171_v62  ;;  %v519_v8 = vsel %vm517_vm2, %v2161_v4, %v2151_v60  ;;  %v518_v19 = vsel %vm517_vm2, %v2172_v16, %v2161_v4 }
 0x116   :  { %719 = vmatpush.msrb.mxu2 %v2603_v2 }
 0x117   :  { %651 = vmatpush.msra.mxu3 %v2511_v21 }
 0x118   :  { %720 = vmatpush.msrb.mxu2 %v2515_v23 }
 0x119   :  { %652 = vmatpush.msra.mxu3 %v586_v5  ;;  %v2609_v6 = vpop.permute.xlu0 %2174 }
 0x11a   :  { %v2176_v7 = vunpack.i.l.bf16 %v2609_v6  ;;  %v2613_v9 = vpop.permute.xlu1 %2179  ;;  %v2177_v18 = vunpack.i.h.bf16 %v2609_v6 }
 0x11b   :  { %653 = vmatpush.msra.mxu3 %v519_v8  ;;  %v2181_v10 = vunpack.i.l.bf16 %v2613_v9  ;;  %v2182_v25 = vunpack.i.h.bf16 %v2613_v9 }
 0x11c   :  { %v588_v12 = vsel %vm584_vm1, %v2147_v50, %v2176_v7  ;;  %v2619_v13 = vsel %vm584_vm1, %v2176_v7, %v2157_v54  ;;  %v2645_v31 = vsel %vm584_vm1, %v2166_v53, %v2177_v18  ;;  %v2693_v53 = vld [vmem:[#allocation7 + $0x8] sm:$0xff] }
 0x11d   :  { %654 = vmatpush.msra.mxu3 %v2509_v20  ;;  %672 = vmatpush.msrb.mxu0 %v588_v12  ;;  %v521_v14 = vsel %vm517_vm2, %v2152_v59, %v2181_v10  ;;  %v2624_v15 = vsel %vm517_vm2, %v2181_v10, %v2162_v63 }
 0x11e   :  { %695 = vmatpush.msrb.mxu1 %v2619_v13  ;;  %721 = vmatpush.msrb.mxu2 %v2619_v13 }
 0x11f   :  { %655 = vmatpush.msra.mxu3 %v585_v17  ;;  %673 = vmatpush.msrb.mxu0 %v521_v14 }
 0x120   :  { %696 = vmatpush.msrb.mxu1 %v2624_v15  ;;  %722 = vmatpush.msrb.mxu2 %v2624_v15 }
 0x121   :  { %656 = vmatpush.msra.mxu3 %v518_v19  ;;  %674 = vmatpush.msrb.mxu0 %v2513_v22  ;;  %v2642_v28 = vpop.permute.xlu0 %2189 }
 0x122   :  { %697 = vmatpush.msrb.mxu1 %v2532_v29  ;;  %723 = vmatpush.msrb.mxu2 %v2532_v29  ;;  %v2192_v44 = vunpack.i.h.bf16 %v2642_v28  ;;  %v2191_v45 = vunpack.i.l.bf16 %v2642_v28  ;;  %v2660_v46 = vpop.permute.xlu1 %2194  ;;  %v1050_v28 = vld [vmem:[#allocation2 + $0xd0] sm:$0xff] }
 0x123   :  { %657 = vmatpush.msra.mxu3 %v2521_v26  ;;  %675 = vmatpush.msrb.mxu0 %v2588_v55  ;;  %v2654_v26 = vsel %vm517_vm2, %v2171_v62, %v2182_v25  ;;  %v2196_v50 = vunpack.i.l.bf16 %v2660_v46 }
 0x124   :  { %698 = vmatpush.msrb.mxu1 %v588_v12  ;;  %724 = vmatpush.msrb.mxu2 %v588_v12  ;;  %v2675_v49 = vsel %vm517_vm2, %v2191_v45, %v2192_v44 }
 0x125   :  { %741 = vmatpush.msrb.mxu3 %v2645_v31  ;;  %676 = vmatpush.msrb.mxu0 %v2599_v1  ;;  %v592_v52 = vsel %vm584_vm1, %v2177_v18, %v2196_v50  ;;  %v2697_v54 = vsel %vm584_vm1, %v2196_v50, %v2186_v37  ;;  %v1049_v37 = vld [vmem:[#allocation2 + $0xc8] sm:$0xff] }
 0x126   :  { %699 = vmatpush.msrb.mxu1 %v521_v14  ;;  %725 = vmatpush.msrb.mxu2 %v521_v14  ;;  %v1057_v50 = vld [vmem:[#allocation2 + $0x108] sm:$0xff] }
 0x127   :  { %742 = vmatpush.msrb.mxu3 %v2654_v26  ;;  %677 = vmatpush.msrb.mxu0 %v2511_v21 }
 0x128   :  { %2049 = vmatmul.msk.f32.vlgmr.msra.gmra.mxu3 %vm635_vm3, %v2651_v40  ;;  %700 = vmatpush.msrb.mxu1 %v2513_v22 }
 0x129   :  { %726 = vmatpush.msrb.mxu2 %v2513_v22  ;;  %743 = vmatpush.msrb.mxu3 %v2525_v27  ;;  %v2681_v22 = vpop.permute.xlu2 %2199  ;;  %v2720_v57 = vpop.permute.xlu0 %2204 }
 0x12a   :  { %678 = vmatpush.msrb.mxu0 %v586_v5  ;;  %701 = vmatpush.msrb.mxu1 %v2588_v55  ;;  %v2201_v51 = vunpack.i.l.bf16 %v2681_v22  ;;  %v2202_v59 = vunpack.i.h.bf16 %v2681_v22  ;;  %v2731_v60 = vpop.permute.xlu1 %2209  ;;  %v2206_v61 = vunpack.i.l.bf16 %v2720_v57  ;;  %v1060_v22 = vld [vmem:[#allocation2 + $0x120] sm:$0xff] }
 0x12b   :  { %810 = vmatpush.msra.mxu2 %v2670_v48  ;;  %744 = vmatpush.msrb.mxu3 %v2592_v56  ;;  %v2212_v62 = vunpack.i.h.bf16 %v2731_v60  ;;  %v2211_v63 = vunpack.i.l.bf16 %v2731_v60 }
 0x12c   :  { %679 = vmatpush.msrb.mxu0 %v519_v8  ;;  %702 = vmatpush.msrb.mxu1 %v2599_v1  ;;  %v525_v55 = vsel %vm517_vm2, %v2182_v25, %v2201_v51  ;;  %v2744_v0 = vsel %vm517_vm2, %v2192_v44, %v2202_v59  ;;  %v1052_v44 = vld [vmem:[#allocation2 + $0xe0] sm:$0xff] }
 0x12d   :  { %811 = vmatpush.msra.mxu2 %v2675_v49  ;;  %745 = vmatpush.msrb.mxu3 %v2603_v2  ;;  %v2765_v5 = vsel %vm517_vm2, %v2211_v63, %v2212_v62 }
 0x12e   :  { %2055 = vmatmul.msk.f32.vlgmr.msrb.gmra.mxu2 %vm635_vm3, %v2651_v40  ;;  %680 = vmatpush.msrb.mxu0 %v2509_v20  ;;  %v2705_v20 = vsel %vm517_vm2, %v2201_v51, %v2191_v45  ;;  %v1053_v45 = vld [vmem:[#allocation2 + $0xe8] sm:$0xff] }
 0x12f   :  { %812 = vmatpush.msra.mxu2 %v2538_v32  ;;  %703 = vmatpush.msrb.mxu1 %v2511_v21  ;;  %v2197_v21 = vunpack.i.h.bf16 %v2660_v46  ;;  %v1058_v46 = vld [vmem:[#allocation2 + $0x110] sm:$0xff]  ;;  %v1061_v51 = vld [vmem:[#allocation2 + $0x128] sm:$0xff] }
 0x130   :  { %746 = vmatpush.msrb.mxu3 %v2515_v23  ;;  %764 = vmatpush.msra.mxu0 %v592_v52 }
 0x131   :  { %787 = vmatpush.msra.mxu1 %v2697_v54  ;;  %813 = vmatpush.msra.mxu2 %v2697_v54  ;;  %v2728_v58 = vsel %vm584_vm1, %v2187_v36, %v2197_v21  ;;  %v2754_v4 = vpop.permute.xlu2 %2214  ;;  %v1048_v36 = vld [vmem:[#allocation2 + $0xc0] sm:$0xff] }
 0x132   :  { %2050 = vmatmul.msk.f32.gmra.mxu3 %vm635_vm3, %v2693_v53  ;;  %765 = vmatpush.msra.mxu0 %v525_v55  ;;  %v2216_v6 = vunpack.i.l.bf16 %v2754_v4  ;;  %v2217_v8 = vunpack.i.h.bf16 %v2754_v4  ;;  %v2225_v10 = vpop.permute.xlu1 %2224 }
 0x133   :  { %747 = vmatpush.msrb.mxu3 %v2619_v13  ;;  %788 = vmatpush.msra.mxu1 %v2705_v20  ;;  %v2227_v11 = vunpack.i.h.bf16 %v2225_v10  ;;  %v2226_v12 = vunpack.i.l.bf16 %v2225_v10 }
 0x134   :  { %814 = vmatpush.msra.mxu2 %v2705_v20  ;;  %2051 = vmatmul.msk.f32.vlgmr.msrb.gmra.mxu0 %vm635_vm3, %v2651_v40  ;;  %v596_v7 = vsel %vm584_vm1, %v2197_v21, %v2216_v6 }
 0x135   :  { %2053 = vmatmul.msk.f32.vlgmr.msrb.gmra.mxu1 %vm635_vm3, %v2651_v40  ;;  %748 = vmatpush.msrb.mxu3 %v2624_v15  ;;  %v633_v17 = vsel %vm584_vm1, %v2226_v12, %v2227_v11 }
 0x136   :  { %766 = vmatpush.msra.mxu0 %v2534_v30  ;;  %789 = vmatpush.msra.mxu1 %v2545_v34 }
 0x137   :  { %815 = vmatpush.msra.mxu2 %v2545_v34  ;;  %749 = vmatpush.msrb.mxu3 %v2532_v29  ;;  %v2207_v29 = vunpack.i.h.bf16 %v2720_v57 }
 0x138   :  { %2056 = vmatmul.msk.f32.gmra.mxu2 %vm635_vm3, %v2693_v53  ;;  %767 = vmatpush.msra.mxu0 %v2645_v31 }
 0x139   :  { %790 = vmatpush.msra.mxu1 %v592_v52  ;;  %816 = vmatpush.msra.mxu2 %v592_v52  ;;  %v2752_v1 = vsel %vm584_vm1, %v2206_v61, %v2207_v29  ;;  %v2817_v13 = vsel %vm584_vm1, %v2207_v29, %v2217_v8  ;;  %v2230_v14 = vpop.permute.xlu2 %2229 }
 0x13a   :  { %833 = vmatpush.msra.mxu3 %v2728_v58  ;;  %768 = vmatpush.msra.mxu0 %v2654_v26  ;;  %v2232_v15 = vunpack.i.h.bf16 %v2230_v14  ;;  %v2231_v16 = vunpack.i.l.bf16 %v2230_v14  ;;  %v516_v25 = vpop.permute.xlu1 %515 }
 0x13b   :  { %791 = vmatpush.msra.mxu1 %v525_v55  ;;  %817 = vmatpush.msra.mxu2 %v525_v55 }
 0x13c   :  { %2057 = vmatmul.msk.f32.vlgmr.msrb.gmra.mxu3 %vm635_vm3, %v2651_v40  ;;  %769 = vmatpush.msra.mxu0 %v2525_v27  ;;  %v629_v18 = vsel %vm517_vm2, %v2231_v16, %v2232_v15 }
 0x13d   :  { %834 = vmatpush.msra.mxu3 %v2744_v0  ;;  %792 = vmatpush.msra.mxu1 %v2534_v30 }
 0x13e   :  { %818 = vmatpush.msra.mxu2 %v2534_v30  ;;  %2052 = vmatmul.msk.f32.gmra.mxu0 %vm635_vm3, %v2693_v53  ;;  %v2773_v30 = vpop.permute.xlu0 %2219 }
 0x13f   :  { %2054 = vmatmul.msk.f32.gmra.mxu1 %vm635_vm3, %v2693_v53  ;;  %835 = vmatpush.msra.mxu3 %v2540_v33  ;;  %v2222_v9 = vunpack.i.h.bf16 %v2773_v30 }
 0x140   :  { %902 = vmatpush.msrb.mxu2 %v2752_v1  ;;  %770 = vmatpush.msra.mxu0 %v2592_v56  ;;  %v2221_v56 = vunpack.i.l.bf16 %v2773_v30 }
 0x141   :  { %793 = vmatpush.msra.mxu1 %v2645_v31  ;;  %2063 = vmatmul.msk.f32.vlgmr.msra.gmra.mxu2 %vm635_vm3, %v2651_v40  ;;  %v1045_v31 = vld [vmem:[#allocation2 + $0xa8] sm:$0xff] }
 0x142   :  { %836 = vmatpush.msra.mxu3 %v2670_v48  ;;  %903 = vmatpush.msrb.mxu2 %v2765_v5 }
 0x143   :  { %771 = vmatpush.msra.mxu0 %v2603_v2  ;;  %794 = vmatpush.msra.mxu1 %v2654_v26  ;;  %v2788_v2 = vsel %vm584_vm1, %v2216_v6, %v2206_v61  ;;  %v1055_v26 = vld [vmem:[#allocation2 + $0xf8] sm:$0xff] }
 0x144   :  { %837 = vmatpush.msra.mxu3 %v2675_v49  ;;  %904 = vmatpush.msrb.mxu2 %v2556_v38 }
 0x145   :  { %772 = vmatpush.msra.mxu0 %v2515_v23  ;;  %795 = vmatpush.msra.mxu1 %v2525_v27  ;;  %v529_v23 = vsel %vm517_vm2, %v2202_v59, %v2221_v56  ;;  %v2800_v27 = vsel %vm517_vm2, %v2221_v56, %v2211_v63 }
 0x146   :  { %2058 = vmatmul.msk.f32.gmra.mxu3 %vm635_vm3, %v2693_v53  ;;  %905 = vmatpush.msrb.mxu2 %v2788_v2  ;;  %v583_v19 = vpop.permute.xlu0 %582 }
 0x147   :  { %856 = vmatpush.msrb.mxu0 %v596_v7  ;;  %838 = vmatpush.msra.mxu3 %v2538_v32  ;;  %v600_v24 = vsel %vm584_vm1, %v2217_v8, %v583_v19 }
 0x148   :  { %879 = vmatpush.msrb.mxu1 %v2788_v2  ;;  %2059 = vmatmul.msk.f32.vlgmr.msra.gmra.mxu0 %vm635_vm3, %v2651_v40 }
 0x149   :  { %2061 = vmatmul.msk.f32.vlgmr.msra.gmra.mxu1 %vm635_vm3, %v2651_v40  ;;  %839 = vmatpush.msra.mxu3 %v2697_v54 }
 0x14a   :  { %857 = vmatpush.msrb.mxu0 %v529_v23  ;;  %880 = vmatpush.msrb.mxu1 %v2800_v27 }
 0x14b   :  { %906 = vmatpush.msrb.mxu2 %v2800_v27  ;;  %840 = vmatpush.msra.mxu3 %v2705_v20 }
 0x14c   :  { %2064 = vmatmul.msk.f32.gmra.mxu2 %vm635_vm3, %v2693_v53  ;;  %858 = vmatpush.msrb.mxu0 %v2547_v35 }
 0x14d   :  { %881 = vmatpush.msrb.mxu1 %v2567_v42  ;;  %907 = vmatpush.msrb.mxu2 %v2567_v42 }
 0x14e   :  { %841 = vmatpush.msra.mxu3 %v2545_v34  ;;  %859 = vmatpush.msrb.mxu0 %v2728_v58  ;;  %v2826_v34 = vsel %vm517_vm2, %v2212_v62, %v2222_v9 }
 0x14f   :  { %882 = vmatpush.msrb.mxu1 %v596_v7  ;;  %908 = vmatpush.msrb.mxu2 %v596_v7 }
 0x150   :  { %925 = vmatpush.msrb.mxu3 %v2817_v13  ;;  %860 = vmatpush.msrb.mxu0 %v2744_v0 }
 0x151   :  { %2065 = vmatmul.msk.f32.vlgmr.msra.gmra.mxu3 %vm635_vm3, %v2651_v40  ;;  %883 = vmatpush.msrb.mxu1 %v529_v23 }
 0x152   :  { %909 = vmatpush.msrb.mxu2 %v529_v23  ;;  %926 = vmatpush.msrb.mxu3 %v2826_v34 }
 0x153   :  { %2060 = vmatmul.msk.f32.gmra.mxu0 %vm635_vm3, %v2693_v53  ;;  %2062 = vmatmul.msk.f32.gmra.mxu1 %vm635_vm3, %v2693_v53 }
 0x154   :  { %861 = vmatpush.msrb.mxu0 %v2540_v33  ;;  %884 = vmatpush.msrb.mxu1 %v2547_v35 }
 0x155   :  { %910 = vmatpush.msrb.mxu2 %v2547_v35  ;;  %927 = vmatpush.msrb.mxu3 %v2558_v39  ;;  %v624_v35 = vsel %vm584_vm1, %v583_v19, %v2226_v12 }
 0x156   :  { %862 = vmatpush.msrb.mxu0 %v2670_v48  ;;  %885 = vmatpush.msrb.mxu1 %v2728_v58  ;;  %v1059_v48 = vld [vmem:[#allocation2 + $0x118] sm:$0xff] }
 0x157   :  { %994 = vmatpush.msra.mxu2 %v633_v17  ;;  %928 = vmatpush.msrb.mxu3 %v2752_v1 }
 0x158   :  { %2071 = vmatmul.msk.f32.vlgmr.msrb.gmra.mxu2 %vm635_vm3, %v2651_v40  ;;  %863 = vmatpush.msrb.mxu0 %v2675_v49  ;;  %v1056_v49 = vld [vmem:[#allocation2 + $0x100] sm:$0xff] }
 0x159   :  { %995 = vmatpush.msra.mxu2 %v629_v18  ;;  %886 = vmatpush.msrb.mxu1 %v2744_v0 }
 0x15a   :  { %929 = vmatpush.msrb.mxu3 %v2765_v5  ;;  %864 = vmatpush.msrb.mxu0 %v2538_v32  ;;  %v533_v32 = vsel %vm517_vm2, %v2222_v9, %v516_v25 }
 0x15b   :  { %996 = vmatpush.msra.mxu2 %v2569_v43  ;;  %2066 = vmatmul.msk.f32.gmra.mxu3 %vm635_vm3, %v2693_v53  ;;  %v620_v43 = vsel %vm517_vm2, %v516_v25, %v2231_v16 }
 0x15c   :  { %887 = vmatpush.msrb.mxu1 %v2540_v33  ;;  %930 = vmatpush.msrb.mxu3 %v2556_v38  ;;  %v1043_v33 = vld [vmem:[#allocation2 + $0x98] sm:$0xff] }
 0x15d   :  { %948 = vmatpush.msra.mxu0 %v600_v24  ;;  %997 = vmatpush.msra.mxu2 %v624_v35 }
 0x15e   :  { %971 = vmatpush.msra.mxu1 %v624_v35  ;;  %2067 = vmatmul.msk.f32.vlgmr.msrb.gmra.mxu0 %vm635_vm3, %v2651_v40 }
 0x15f   :  { %2069 = vmatmul.msk.f32.vlgmr.msrb.gmra.mxu1 %vm635_vm3, %v2651_v40  ;;  %931 = vmatpush.msrb.mxu3 %v2788_v2 }
 0x160   :  { %949 = vmatpush.msra.mxu0 %v533_v32  ;;  %972 = vmatpush.msra.mxu1 %v620_v43 }
 0x161   :  { %998 = vmatpush.msra.mxu2 %v620_v43  ;;  %932 = vmatpush.msrb.mxu3 %v2800_v27 }
 0x162   :  { %2072 = vmatmul.msk.f32.gmra.mxu2 %vm635_vm3, %v2693_v53  ;;  %950 = vmatpush.msra.mxu0 %v2565_v41 }
 0x163   :  { %973 = vmatpush.msra.mxu1 %v2577_v47  ;;  %999 = vmatpush.msra.mxu2 %v2577_v47  ;;  %v1047_v47 = vld [vmem:[#allocation2 + $0xb8] sm:$0xff] }
 0x164   :  { %933 = vmatpush.msrb.mxu3 %v2567_v42  ;;  %951 = vmatpush.msra.mxu0 %v2817_v13  ;;  %v1046_v42 = vld [vmem:[#allocation2 + $0xb0] sm:$0xff] }
 0x165   :  { %974 = vmatpush.msra.mxu1 %v600_v24  ;;  %1000 = vmatpush.msra.mxu2 %v600_v24 }
 0x166   :  { %2073 = vmatmul.msk.f32.vlgmr.msrb.gmra.mxu3 %vm635_vm3, %v2651_v40  ;;  %952 = vmatpush.msra.mxu0 %v2826_v34 }
 0x167   :  { %975 = vmatpush.msra.mxu1 %v533_v32  ;;  %1001 = vmatpush.msra.mxu2 %v533_v32 }
 0x168   :  { %2068 = vmatmul.msk.f32.gmra.mxu0 %vm635_vm3, %v2693_v53  ;;  %2070 = vmatmul.msk.f32.gmra.mxu1 %vm635_vm3, %v2693_v53 }
 0x169   :  { %953 = vmatpush.msra.mxu0 %v2558_v39  ;;  %976 = vmatpush.msra.mxu1 %v2565_v41 }
 0x16a   :  { %1002 = vmatpush.msra.mxu2 %v2565_v41  ;;  %1077 = vmatpush.msra.mxu3 %v1043_v33  ;;  %v1044_v41 = vld [vmem:[#allocation2 + $0xa0] sm:$0xff] }
 0x16b   :  { %2079 = vmatmul.msk.f32.vlgmr.msra.gmra.mxu2 %vm635_vm3, %v2651_v40  ;;  %954 = vmatpush.msra.mxu0 %v2752_v1 }
 0x16c   :  { %977 = vmatpush.msra.mxu1 %v2817_v13  ;;  %1137 = vmatpush.msrb.mxu2 %v1046_v42 }
 0x16d   :  { %955 = vmatpush.msra.mxu0 %v2765_v5  ;;  %1157 = vmatpush.msrb.mxu3 %v1047_v47 }
 0x16e   :  { %978 = vmatpush.msra.mxu1 %v2826_v34  ;;  %2074 = vmatmul.msk.f32.gmra.mxu3 %vm635_vm3, %v2693_v53 }
 0x16f   :  { %956 = vmatpush.msra.mxu0 %v2556_v38  ;;  %1217 = vmatpush.msra.mxu2 %v1050_v28  ;;  %v1051_v38 = vld [vmem:[#allocation2 + $0xd8] sm:$0xff] }
 0x170   :  { %979 = vmatpush.msra.mxu1 %v2558_v39  ;;  %2075 = vmatmul.msk.f32.vlgmr.msra.gmra.mxu0 %vm635_vm3, %v2651_v40  ;;  %v1054_v39 = vld [vmem:[#allocation2 + $0xf0] sm:$0xff] }
 0x171   :  { %2077 = vmatmul.msk.f32.vlgmr.msra.gmra.mxu1 %vm635_vm3, %v2651_v40  ;;  %1097 = vmatpush.msrb.mxu0 %v1044_v41 }
 0x172   :  { %1117 = vmatpush.msrb.mxu1 %v1045_v31 }
 0x173   :  { %1177 = vmatpush.msra.mxu0 %v1048_v36  ;;  %2080 = vmatmul.msk.f32.gmra.mxu2 %vm635_vm3, %v2693_v53 }
 0x174   :  { %1197 = vmatpush.msra.mxu1 %v1049_v37 }
 0x176   :  { %2081 = vmatmul.msk.f32.vlgmr.msra.gmra.mxu3 %vm82_vm0, %v2469_v3 }
 0x177   :  { %1237 = vmatpush.msra.mxu3 %v1051_v38 }
 0x178   :  { %2076 = vmatmul.msk.f32.gmra.mxu0 %vm635_vm3, %v2693_v53 }
 0x179   :  { %2078 = vmatmul.msk.f32.gmra.mxu1 %vm635_vm3, %v2693_v53 }
 0x17b   :  { %2084 = vmatmul.msk.f32.vlgmr.msrb.gmra.mxu2 %vm82_vm0, %v2469_v3 }
 0x17c   :  { %1297 = vmatpush.msrb.mxu2 %v1054_v39 }
 0x17e   :  { %2085 = vmatmul.msk.f32.vlgmr.msrb.gmra.mxu3 %vm82_vm0, %v2469_v3 }
 0x17f   :  { %1317 = vmatpush.msrb.mxu3 %v1055_v26 }
 0x180   :  { %2082 = vmatmul.msk.f32.vlgmr.msrb.gmra.mxu0 %vm82_vm0, %v2469_v3 }
 0x181   :  { %2083 = vmatmul.msk.f32.vlgmr.msrb.gmra.mxu1 %vm82_vm0, %v2469_v3  ;;  %1257 = vmatpush.msrb.mxu0 %v1052_v44 }
 0x182   :  { %1277 = vmatpush.msrb.mxu1 %v1053_v45 }
 0x183   :  { %2088 = vmatmul.msk.f32.vlgmr.msra.gmra.mxu2 %vm82_vm0, %v2469_v3 }
 0x184   :  { %1377 = vmatpush.msra.mxu2 %v1058_v46 }
 0x186   :  { %2089 = vmatmul.msk.f32.vlgmr.msra.gmra.mxu3 %vm82_vm0, %v2469_v3 }
 0x187   :  { %1397 = vmatpush.msra.mxu3 %v1059_v48 }
 0x188   :  { %2086 = vmatmul.msk.f32.vlgmr.msra.gmra.mxu0 %vm82_vm0, %v2469_v3 }
 0x189   :  { %2087 = vmatmul.msk.f32.vlgmr.msra.gmra.mxu1 %vm82_vm0, %v2469_v3  ;;  %1337 = vmatpush.msra.mxu0 %v1056_v49 }
 0x18a   :  { %1357 = vmatpush.msra.mxu1 %v1057_v50 }
 0x18b   :  { %2092 = vmatmul.msk.f32.vlgmr.msrb.gmra.mxu2 %vm82_vm0, %v2469_v3 }
 0x18e   :  { %2093 = vmatmul.msk.f32.vlgmr.msrb.gmra.mxu3 %vm82_vm0, %v2469_v3 }
 0x190   :  { %2090 = vmatmul.msk.f32.vlgmr.msrb.gmra.mxu0 %vm82_vm0, %v2469_v3 }
 0x191   :  { %2091 = vmatmul.msk.f32.vlgmr.msrb.gmra.mxu1 %vm82_vm0, %v2469_v3  ;;  %1417 = vmatpush.msrb.mxu0 %v1060_v22 }
 0x192   :  { %1437 = vmatpush.msrb.mxu1 %v1061_v51 }
 0x193   :  { %2096 = vmatmul.msk.f32.vlgmr.msra.gmra.mxu2 %vm82_vm0, %v2469_v3 }
 0x196   :  { %2097 = vmatmul.msk.f32.vlgmr.msra.gmra.mxu3 %vm82_vm0, %v2469_v3 }
 0x198   :  { %2094 = vmatmul.msk.f32.vlgmr.msra.gmra.mxu0 %vm82_vm0, %v2469_v3 }
 0x199   :  { %2095 = vmatmul.msk.f32.vlgmr.msra.gmra.mxu1 %vm82_vm0, %v2469_v3 }
 0x1a0   :  { %2098 = vmatmul.msk.f32.vlgmr.msrb.gmra.mxu0 %vm82_vm0, %v2469_v3 }
 0x1a1   :  { %2099 = vmatmul.msk.f32.vlgmr.msrb.gmra.mxu1 %vm82_vm0, %v2469_v3 }
 0x1ab   :  { %v659_v52 = vpop.f32.mrf.mxu3 }
 0x1ac   :  { %1010 = vst [vmem:[#allocation8] sm:$0xff] %v659_v52 }
 0x1b1   :  { %v728_v54 = vpop.f32.mrf.mxu2  ;;  %v682_v55 = vpop.f32.mrf.mxu0 }
 0x1b2   :  { %1013 = vst [vmem:[#allocation8 + $0x18] sm:$0xff] %v728_v54  ;;  %v705_v20 = vpop.f32.mrf.mxu1 }
 0x1b3   :  { %1011 = vst [vmem:[#allocation8 + $0x8] sm:$0xff] %v682_v55 }
 0x1b4   :  { %1012 = vst [vmem:[#allocation8 + $0x10] sm:$0xff] %v705_v20 }
 0x1b5   :  { %v662_v21 = vpop.f32.mrf.mxu3 }
 0x1b6   :  { %1026 = vst [vmem:[#allocation8 + $0x80] sm:$0xff] %v662_v21 }
 0x1bb   :  { %v685_v57 = vpop.f32.mrf.mxu0  ;;  %v731_v58 = vpop.f32.mrf.mxu2 }
 0x1bc   :  { %1027 = vst [vmem:[#allocation8 + $0x88] sm:$0xff] %v685_v57  ;;  %v708_v59 = vpop.f32.mrf.mxu1 }
 0x1bd   :  { %1028 = vst [vmem:[#allocation8 + $0x90] sm:$0xff] %v708_v59 }
 0x1be   :  { %1029 = vst [vmem:[#allocation8 + $0x98] sm:$0xff] %v731_v58 }
 0x1bf   :  { %v751_v60 = vpop.f32.mrf.mxu3 }
 0x1c0   :  { %1014 = vst [vmem:[#allocation8 + $0x20] sm:$0xff] %v751_v60 }
 0x1c4   :  { %v820_v29 = vpop.f32.mrf.mxu2 }
 0x1c5   :  { %v774_v3 = vpop.f32.mrf.mxu0  ;;  %1017 = vst [vmem:[#allocation8 + $0x38] sm:$0xff] %v820_v29 }
 0x1c6   :  { %1015 = vst [vmem:[#allocation8 + $0x28] sm:$0xff] %v774_v3  ;;  %v797_v61 = vpop.f32.mrf.mxu1 }
 0x1c7   :  { %1016 = vst [vmem:[#allocation8 + $0x30] sm:$0xff] %v797_v61 }
 0x1c9   :  { %v754_v62 = vpop.f32.mrf.mxu3 }
 0x1ca   :  { %1030 = vst [vmem:[#allocation8 + $0xa0] sm:$0xff] %v754_v62 }
 0x1cf   :  { %v823_v63 = vpop.f32.mrf.mxu2 }
 0x1d0   :  { %v777_v0 = vpop.f32.mrf.mxu0  ;;  %1033 = vst [vmem:[#allocation8 + $0xb8] sm:$0xff] %v823_v63  ;;  %v800_v1 = vpop.f32.mrf.mxu1 }
 0x1d1   :  { %1031 = vst [vmem:[#allocation8 + $0xa8] sm:$0xff] %v777_v0 }
 0x1d2   :  { %1032 = vst [vmem:[#allocation8 + $0xb0] sm:$0xff] %v800_v1 }
 0x1d4   :  { %v843_v4 = vpop.f32.mrf.mxu3 }
 0x1d5   :  { %1018 = vst [vmem:[#allocation8 + $0x40] sm:$0xff] %v843_v4 }
 0x1db   :  { %v912_v5 = vpop.f32.mrf.mxu2  ;;  %v866_v6 = vpop.f32.mrf.mxu0 }
 0x1dc   :  { %1021 = vst [vmem:[#allocation8 + $0x58] sm:$0xff] %v912_v5  ;;  %v889_v30 = vpop.f32.mrf.mxu1 }
 0x1dd   :  { %1019 = vst [vmem:[#allocation8 + $0x48] sm:$0xff] %v866_v6 }
 0x1de   :  { %1020 = vst [vmem:[#allocation8 + $0x50] sm:$0xff] %v889_v30  ;;  %v846_v56 = vpop.f32.mrf.mxu3 }
 0x1df   :  { %1034 = vst [vmem:[#allocation8 + $0xc0] sm:$0xff] %v846_v56 }
 0x1e5   :  { %v869_v7 = vpop.f32.mrf.mxu0  ;;  %v892_v2 = vpop.f32.mrf.mxu1 }
 0x1e6   :  { %1035 = vst [vmem:[#allocation8 + $0xc8] sm:$0xff] %v869_v7  ;;  %v915_v23 = vpop.f32.mrf.mxu2 }
 0x1e7   :  { %1036 = vst [vmem:[#allocation8 + $0xd0] sm:$0xff] %v892_v2 }
 0x1e8   :  { %1037 = vst [vmem:[#allocation8 + $0xd8] sm:$0xff] %v915_v23 }
 0x1e9   :  { %v935_v27 = vpop.f32.mrf.mxu3 }
 0x1ea   :  { %1022 = vst [vmem:[#allocation8 + $0x60] sm:$0xff] %v935_v27 }
 0x1ed   :  { %v958_v8 = vpop.f32.mrf.mxu0 }
 0x1ee   :  { %1023 = vst [vmem:[#allocation8 + $0x68] sm:$0xff] %v958_v8  ;;  %v981_v9 = vpop.f32.mrf.mxu1  ;;  %v1004_v10 = vpop.f32.mrf.mxu2 }
 0x1ef   :  { %1024 = vst [vmem:[#allocation8 + $0x70] sm:$0xff] %v981_v9 }
 0x1f0   :  { %1025 = vst [vmem:[#allocation8 + $0x78] sm:$0xff] %v1004_v10 }
 0x1f1   :  { %v938_v11 = vpop.f32.mrf.mxu3 }
 0x1f2   :  { %1038 = vst [vmem:[#allocation8 + $0xe0] sm:$0xff] %v938_v11 }
 0x1f5   :  { %v961_v12 = vpop.f32.mrf.mxu0 }
 0x1f6   :  { %1039 = vst [vmem:[#allocation8 + $0xe8] sm:$0xff] %v961_v12  ;;  %v984_v13 = vpop.f32.mrf.mxu1  ;;  %v1007_v14 = vpop.f32.mrf.mxu2 }
 0x1f7   :  { %1040 = vst [vmem:[#allocation8 + $0xf0] sm:$0xff] %v984_v13 }
 0x1f8   :  { %1041 = vst [vmem:[#allocation8 + $0xf8] sm:$0xff] %v1007_v14 }
 0x1f9   :  { %v2938_v34 = vpop.f32.mrf.mxu3 }
 0x1fd   :  { %v2940_v15 = vpop.f32.mrf.mxu0 }
 0x1fe   :  { %v2942_v16 = vpop.f32.mrf.mxu1  ;;  %v2944_v17 = vpop.f32.mrf.mxu2 }
 0x1ff   :  { %v2248_v18 = vpack.i.bf16 %v2944_v17, %v2942_v16 }
 0x201   :  { %2249 = vrot.lane.b32.xlu1 %v2248_v18, %s2435_s2  ;;  %2234 = vrot.lane.b32.xlu2 %v2248_v18, %s2434_s0  ;;  %v2950_v19 = vpop.f32.mrf.mxu3 }
 0x202   :  { %v2238_v35 = vpack.i.bf16 %v2940_v15, %v2950_v19 }
 0x204   :  { %2239 = vrot.lane.b32.xlu0 %v2238_v35, %s2434_s0 }
 0x205   :  { %v2955_v24 = vpop.f32.mrf.mxu0 }
 0x206   :  { %v2957_v25 = vpop.f32.mrf.mxu1  ;;  %v2961_v43 = vpop.f32.mrf.mxu2 }
 0x207   :  { %v2253_v32 = vpack.i.bf16 %v2957_v25, %v2955_v24  ;;  %v2263_v28 = vpack.i.bf16 %v2961_v43, %v2938_v34 }
 0x209   :  { %2259 = vrot.lane.b32.xlu2 %v2238_v35, %s2435_s2  ;;  %2254 = vrot.lane.b32.xlu1 %v2253_v32, %s2435_s2  ;;  %v2965_v33 = vpop.f32.mrf.mxu3 }
 0x20c   :  { %2244 = vrot.lane.b32.xlu0 %v2253_v32, %s2434_s0 }
 0x20d   :  { %v2968_v42 = vpop.f32.mrf.mxu0 }
 0x20e   :  { %v2273_v47 = vpack.i.bf16 %v2968_v42, %v2965_v33  ;;  %v2974_v41 = vpop.f32.mrf.mxu1  ;;  %v2976_v31 = vpop.f32.mrf.mxu2 }
 0x20f   :  { %v2288_v36 = vpack.i.bf16 %v2976_v31, %v2974_v41 }
 0x211   :  { %2264 = vrot.lane.b32.xlu2 %v2263_v28, %s2434_s0  ;;  %2274 = vrot.lane.b32.xlu1 %v2273_v47, %s2434_s0  ;;  %v2992_v26 = vpop.f32.mrf.mxu3 }
 0x214   :  { %2269 = vrot.lane.b32.xlu0 %v2263_v28, %s2435_s2 }
 0x215   :  { %v2989_v39 = vpop.f32.mrf.mxu0 }
 0x216   :  { %v2985_v37 = vpop.f32.mrf.mxu1  ;;  %v2987_v38 = vpop.f32.mrf.mxu2  ;;  %v2293_v45 = vpack.i.bf16 %v2989_v39, %v2992_v26 }
 0x217   :  { %v2303_v44 = vpack.i.bf16 %v2987_v38, %v2985_v37 }
 0x219   :  { %2279 = vrot.lane.b32.xlu2 %v2273_v47, %s2435_s2  ;;  %2289 = vrot.lane.b32.xlu1 %v2288_v36, %s2435_s2  ;;  %v3003_v48 = vpop.f32.mrf.mxu3 }
 0x21c   :  { %2284 = vrot.lane.b32.xlu0 %v2288_v36, %s2434_s0 }
 0x21d   :  { %v3001_v46 = vpop.f32.mrf.mxu0 }
 0x21e   :  { %v2313_v49 = vpack.i.bf16 %v3001_v46, %v3003_v48  ;;  %v1439_v50 = vpop.f32.mrf.mxu1 }
 0x21f   :  { %v2318_v22 = vpack.i.bf16 %v1439_v50, %v3001_v46 }
 0x221   :  { %2304 = vrot.lane.b32.xlu1 %v2303_v44, %s2434_s0  ;;  %2294 = vrot.lane.b32.xlu2 %v2293_v45, %s2434_s0 }
 0x224   :  { %2299 = vrot.lane.b32.xlu0 %v2293_v45, %s2435_s2 }
 0x229   :  { %1491 = vrot.lane.b32.xlu1 %v3003_v48, %s2435_s2  ;;  %2309 = vrot.lane.b32.xlu2 %v2303_v44, %s2435_s2 }
 0x22c   :  { %2314 = vrot.lane.b32.xlu0 %v2313_v49, %s2434_s0 }
 0x231   :  { %1605 = vrot.lane.b32.xlu2 %v1439_v50, %s2434_s0 }
 0x234   :  { %2319 = vrot.lane.b32.xlu0 %v2318_v22, %s2435_s2 }
 0x25b   :  { %v2235_v51 = vpop.permute.xlu2 %2234 }
 0x25c   :  { %v2237_v52 = vunpack.i.h.bf16 %v2235_v51  ;;  %v2236_v54 = vunpack.i.l.bf16 %v2235_v51 }
 0x25e   :  { %v3015_v55 = vsel %vm584_vm1, %v2236_v54, %v2237_v52 }
 0x25f   :  { %1616 = vmatpush.msrb.mxu2 %v3015_v55 }
 0x263   :  { %v2260_v20 = vpop.permute.xlu2 %2259 }
 0x264   :  { %v2261_v61 = vunpack.i.l.bf16 %v2260_v20  ;;  %v2262_v0 = vunpack.i.h.bf16 %v2260_v20 }
 0x26b   :  { %v2265_v1 = vpop.permute.xlu2 %2264 }
 0x26c   :  { %v2266_v30 = vunpack.i.l.bf16 %v2265_v1  ;;  %v2267_v47 = vunpack.i.h.bf16 %v2265_v1 }
 0x273   :  { %v2250_v21 = vpop.permute.xlu1 %2249  ;;  %v2280_v32 = vpop.permute.xlu2 %2279 }
 0x274   :  { %v2252_v57 = vunpack.i.h.bf16 %v2250_v21  ;;  %v2251_v58 = vunpack.i.l.bf16 %v2250_v21  ;;  %v2281_v44 = vunpack.i.l.bf16 %v2280_v32 }
 0x276   :  { %v3019_v59 = vsel %vm517_vm2, %v2251_v58, %v2252_v57  ;;  %v2240_v60 = vpop.permute.xlu0 %2239  ;;  %v3026_v5 = vsel %vm517_vm2, %v2252_v57, %v2261_v61  ;;  %v1494_v6 = vsel %vm517_vm2, %v2262_v0, %v2251_v58 }
 0x277   :  { %1617 = vmatpush.msrb.mxu2 %v3019_v59  ;;  %v2242_v29 = vunpack.i.h.bf16 %v2240_v60  ;;  %v2241_v3 = vunpack.i.l.bf16 %v2240_v60 }
 0x279   :  { %1618 = vmatpush.msrb.mxu2 %v2942_v16  ;;  %v1560_v62 = vsel %vm584_vm1, %v2242_v29, %v2236_v54  ;;  %v1562_v63 = vsel %vm584_vm1, %v2237_v52, %v2241_v3  ;;  %v1559_v8 = vsel %vm584_vm1, %v2266_v30, %v2242_v29  ;;  %v2282_v54 = vunpack.i.h.bf16 %v2280_v32 }
 0x27a   :  { %1639 = vmatpush.msrb.mxu3 %v1562_v63 }
 0x27b   :  { %1619 = vmatpush.msrb.mxu2 %v1560_v62  ;;  %v2255_v4 = vpop.permute.xlu1 %2254  ;;  %v3106_v57 = vsel %vm517_vm2, %v2281_v44, %v2282_v54 }
 0x27c   :  { %1640 = vmatpush.msrb.mxu3 %v3026_v5  ;;  %v2256_v7 = vunpack.i.l.bf16 %v2255_v4  ;;  %v2257_v27 = vunpack.i.h.bf16 %v2255_v4 }
 0x27d   :  { %1620 = vmatpush.msrb.mxu2 %v1494_v6 }
 0x27e   :  { %1641 = vmatpush.msrb.mxu3 %v2944_v17  ;;  %v2245_v56 = vpop.permute.xlu0 %2244  ;;  %v3044_v11 = vsel %vm517_vm2, %v2261_v61, %v2256_v7  ;;  %v3049_v13 = vsel %vm517_vm2, %v2256_v7, %v2257_v27 }
 0x27f   :  { %1621 = vmatpush.msrb.mxu2 %v2940_v15  ;;  %v2247_v2 = vunpack.i.h.bf16 %v2245_v56  ;;  %v2246_v23 = vunpack.i.l.bf16 %v2245_v56  ;;  %v3199_v56 = vld [vmem:[#allocation7 + $0x8] sm:$0xff] }
 0x280   :  { %1642 = vmatpush.msrb.mxu3 %v3015_v55 }
 0x281   :  { %1622 = vmatpush.msrb.mxu2 %v1559_v8  ;;  %v3035_v9 = vsel %vm584_vm1, %v2241_v3, %v2246_v23  ;;  %v3038_v10 = vsel %vm584_vm1, %v2246_v23, %v2247_v2  ;;  %v3067_v49 = vsel %vm584_vm1, %v2247_v2, %v2267_v47 }
 0x282   :  { %1643 = vmatpush.msrb.mxu3 %v3019_v59  ;;  %1662 = vmatpush.msra.mxu0 %v3035_v9 }
 0x283   :  { %1685 = vmatpush.msra.mxu1 %v3038_v10  ;;  %v2275_v12 = vpop.permute.xlu1 %2274 }
 0x284   :  { %1644 = vmatpush.msrb.mxu3 %v2942_v16  ;;  %1663 = vmatpush.msra.mxu0 %v3044_v11  ;;  %v2276_v18 = vunpack.i.l.bf16 %v2275_v12  ;;  %v2277_v52 = vunpack.i.h.bf16 %v2275_v12 }
 0x285   :  { %1686 = vmatpush.msra.mxu1 %v3049_v13 }
 0x286   :  { %1645 = vmatpush.msrb.mxu3 %v1560_v62  ;;  %v2270_v14 = vpop.permute.xlu0 %2269  ;;  %1664 = vmatpush.msra.mxu0 %v2950_v19  ;;  %v3060_v45 = vsel %vm584_vm1, %v2267_v47, %v2276_v18  ;;  %v3099_v21 = vsel %vm584_vm1, %v2276_v18, %v2277_v52 }
 0x287   :  { %v2271_v35 = vunpack.i.l.bf16 %v2270_v14  ;;  %1687 = vmatpush.msra.mxu1 %v2955_v24  ;;  %v2272_v28 = vunpack.i.h.bf16 %v2270_v14 }
 0x288   :  { %1646 = vmatpush.msrb.mxu3 %v1494_v6  ;;  %1665 = vmatpush.msra.mxu0 %v1562_v63 }
 0x289   :  { %1688 = vmatpush.msra.mxu1 %v3035_v9  ;;  %v1493_v36 = vsel %vm517_vm2, %v2271_v35, %v2262_v0 }
 0x28a   :  { %1623 = vmatpush.msrb.mxu2 %v1493_v36  ;;  %1647 = vmatpush.msrb.mxu3 %v2940_v15  ;;  %v3070_v15 = vsel %vm517_vm2, %v2272_v28, %v2281_v44 }
 0x28b   :  { %1666 = vmatpush.msra.mxu0 %v3026_v5  ;;  %1689 = vmatpush.msra.mxu1 %v3044_v11  ;;  %v3078_v51 = vpop.permute.xlu1 %2289 }
 0x28c   :  { %1731 = vmatpush.msra.mxu3 %v3060_v45  ;;  %1624 = vmatpush.msrb.mxu2 %v2938_v34  ;;  %v3076_v34 = vsel %vm517_vm2, %v2257_v27, %v2272_v28  ;;  %v2292_v3 = vunpack.i.h.bf16 %v3078_v51 }
 0x28d   :  { %1667 = vmatpush.msra.mxu0 %v2944_v17  ;;  %1690 = vmatpush.msra.mxu1 %v2950_v19 }
 0x28e   :  { %1708 = vmatpush.msra.mxu2 %v3067_v49  ;;  %1732 = vmatpush.msra.mxu3 %v3070_v15  ;;  %v2285_v50 = vpop.permute.xlu0 %2284 }
 0x28f   :  { %v2286_v22 = vunpack.i.l.bf16 %v2285_v50  ;;  %1668 = vmatpush.msra.mxu0 %v3015_v55  ;;  %1691 = vmatpush.msra.mxu1 %v1562_v63  ;;  %v2291_v55 = vunpack.i.l.bf16 %v3078_v51 }
 0x290   :  { %1709 = vmatpush.msra.mxu2 %v3076_v34  ;;  %1733 = vmatpush.msra.mxu3 %v2961_v43 }
 0x291   :  { %2100 = vmatmul.msk.f32.vlgmr.msrb.gmra.mxu2 %vm635_vm3, %v2651_v40  ;;  %2102 = vmatmul.msk.f32.vlgmr.msrb.gmra.mxu3 %vm635_vm3, %v2651_v40  ;;  %v3092_v20 = vsel %vm584_vm1, %v2277_v52, %v2286_v22 }
 0x292   :  { %1669 = vmatpush.msra.mxu0 %v3019_v59  ;;  %1692 = vmatpush.msra.mxu1 %v3026_v5  ;;  %v2295_v59 = vpop.permute.xlu2 %2294 }
 0x293   :  { %1710 = vmatpush.msra.mxu2 %v2957_v25  ;;  %1734 = vmatpush.msra.mxu3 %v3067_v49  ;;  %v3151_v62 = vpop.permute.xlu1 %2304  ;;  %v2297_v63 = vunpack.i.h.bf16 %v2295_v59 }
 0x294   :  { %1670 = vmatpush.msra.mxu0 %v2942_v16  ;;  %1693 = vmatpush.msra.mxu1 %v2944_v17  ;;  %v3109_v16 = vsel %vm517_vm2, %v2282_v54, %v2291_v55  ;;  %v2287_v17 = vunpack.i.h.bf16 %v2285_v50  ;;  %v2306_v0 = vunpack.i.l.bf16 %v3151_v62  ;;  %v2307_v2 = vunpack.i.h.bf16 %v3151_v62 }
 0x295   :  { %1711 = vmatpush.msra.mxu2 %v3038_v10  ;;  %1735 = vmatpush.msra.mxu3 %v3076_v34 }
 0x296   :  { %1754 = vmatpush.msrb.mxu0 %v3099_v21  ;;  %1777 = vmatpush.msrb.mxu1 %v3092_v20  ;;  %v2300_v58 = vpop.permute.xlu0 %2299  ;;  %v3181_v6 = vsel %vm584_vm1, %v2297_v63, %v2306_v0 }
 0x297   :  { %1712 = vmatpush.msra.mxu2 %v3049_v13  ;;  %1736 = vmatpush.msra.mxu3 %v2957_v25  ;;  %v2301_v60 = vunpack.i.l.bf16 %v2300_v58  ;;  %v2302_v4 = vunpack.i.h.bf16 %v2300_v58 }
 0x298   :  { %1755 = vmatpush.msrb.mxu0 %v3106_v57  ;;  %1778 = vmatpush.msrb.mxu1 %v3109_v16 }
 0x299   :  { %2104 = vmatmul.msk.f32.vlgmr.msra.gmra.mxu0 %vm635_vm3, %v2651_v40  ;;  %2106 = vmatmul.msk.f32.vlgmr.msra.gmra.mxu1 %vm635_vm3, %v2651_v40  ;;  %v2296_v40 = vunpack.i.l.bf16 %v2295_v59  ;;  %v3149_v61 = vsel %vm517_vm2, %v2292_v3, %v2301_v60 }
 0x29a   :  { %1713 = vmatpush.msra.mxu2 %v2955_v24  ;;  %1737 = vmatpush.msra.mxu3 %v3038_v10  ;;  %v2310_v1 = vpop.permute.xlu2 %2309 }
 0x29b   :  { %1756 = vmatpush.msrb.mxu0 %v2965_v33  ;;  %1779 = vmatpush.msrb.mxu1 %v2968_v42  ;;  %v3134_v29 = vsel %vm584_vm1, %v2287_v17, %v2296_v40  ;;  %v3178_v5 = vsel %vm584_vm1, %v2296_v40, %v2297_v63  ;;  %v2311_v30 = vunpack.i.l.bf16 %v2310_v1  ;;  %v1492_v27 = vpop.permute.xlu1 %1491 }
 0x29c   :  { %2101 = vmatmul.msk.f32.gmra.mxu2 %vm635_vm3, %v2693_v53  ;;  %2103 = vmatmul.msk.f32.gmra.mxu3 %vm635_vm3, %v2693_v53 }
 0x29d   :  { %1714 = vmatpush.msra.mxu2 %v3035_v9  ;;  %1738 = vmatpush.msra.mxu3 %v3049_v13  ;;  %v2312_v9 = vunpack.i.h.bf16 %v2310_v1 }
 0x29e   :  { %1757 = vmatpush.msrb.mxu0 %v3060_v45  ;;  %1780 = vmatpush.msrb.mxu1 %v3099_v21  ;;  %v2315_v7 = vpop.permute.xlu0 %2314 }
 0x29f   :  { %1715 = vmatpush.msra.mxu2 %v3044_v11  ;;  %1739 = vmatpush.msra.mxu3 %v2955_v24  ;;  %v3146_v24 = vsel %vm584_vm1, %v2286_v22, %v2287_v17  ;;  %v2316_v23 = vunpack.i.l.bf16 %v2315_v7  ;;  %v1508_v10 = vsel %vm517_vm2, %v2312_v9, %v1492_v27  ;;  %v2317_v11 = vunpack.i.h.bf16 %v2315_v7 }
 0x2a0   :  { %1758 = vmatpush.msrb.mxu0 %v3070_v15  ;;  %1781 = vmatpush.msrb.mxu1 %v3106_v57 }
 0x2a1   :  { %1823 = vmatpush.msrb.mxu3 %v3134_v29  ;;  %1716 = vmatpush.msra.mxu2 %v2950_v19  ;;  %v3157_v19 = vld [vmem:[#allocation7] sm:$0xff]  ;;  %v3219_v8 = vsel %vm584_vm1, %v2307_v2, %v2316_v23  ;;  %v1598_v35 = vsel %vm584_vm1, %v2316_v23, %v2317_v11 }
 0x2a2   :  { %1759 = vmatpush.msrb.mxu0 %v2961_v43  ;;  %1782 = vmatpush.msrb.mxu1 %v2965_v33  ;;  %v1606_v13 = vpop.permute.xlu2 %1605 }
 0x2a3   :  { %2105 = vmatmul.msk.f32.gmra.mxu0 %vm635_vm3, %v2693_v53  ;;  %2107 = vmatmul.msk.f32.gmra.mxu1 %vm635_vm3, %v2693_v53  ;;  %v3164_v53 = vsel %vm517_vm2, %v2291_v55, %v2292_v3  ;;  %v1607_v32 = vsel %vm584_vm1, %v2317_v11, %v1606_v13 }
 0x2a4   :  { %1800 = vmatpush.msrb.mxu2 %v3146_v24  ;;  %1824 = vmatpush.msrb.mxu3 %v3149_v61 }
 0x2a5   :  { %1760 = vmatpush.msrb.mxu0 %v3067_v49  ;;  %1783 = vmatpush.msrb.mxu1 %v3060_v45 }
 0x2a6   :  { %2108 = vmatmul.msk.f32.vlgmr.msra.gmra.mxu2 %vm635_vm3, %v3157_v19  ;;  %2110 = vmatmul.msk.f32.vlgmr.msra.gmra.mxu3 %vm635_vm3, %v3157_v19  ;;  %v2320_v12 = vpop.permute.xlu0 %2319 }
 0x2a7   :  { %1801 = vmatpush.msrb.mxu2 %v3164_v53  ;;  %1825 = vmatpush.msrb.mxu3 %v2976_v31  ;;  %v2322_v14 = vunpack.i.h.bf16 %v2320_v12  ;;  %v2321_v18 = vunpack.i.l.bf16 %v2320_v12 }
 0x2a8   :  { %1761 = vmatpush.msrb.mxu0 %v3076_v34  ;;  %1784 = vmatpush.msrb.mxu1 %v3070_v15 }
 0x2a9   :  { %1802 = vmatpush.msrb.mxu2 %v2974_v41  ;;  %1826 = vmatpush.msrb.mxu3 %v3146_v24 }
 0x2aa   :  { %1762 = vmatpush.msrb.mxu0 %v2957_v25  ;;  %1785 = vmatpush.msrb.mxu1 %v2961_v43  ;;  %v3192_v25 = vsel %vm517_vm2, %v2301_v60, %v2302_v4  ;;  %v3195_v43 = vsel %vm517_vm2, %v2302_v4, %v2311_v30 }
 0x2ab   :  { %1803 = vmatpush.msrb.mxu2 %v3092_v20  ;;  %1827 = vmatpush.msrb.mxu3 %v3164_v53 }
 0x2ac   :  { %1846 = vmatpush.msra.mxu0 %v3178_v5  ;;  %1869 = vmatpush.msra.mxu1 %v3181_v6 }
 0x2ad   :  { %2112 = vmatmul.msk.f32.vlgmr.msrb.gmra.mxu0 %vm635_vm3, %v3157_v19  ;;  %2114 = vmatmul.msk.f32.vlgmr.msrb.gmra.mxu1 %vm635_vm3, %v3157_v19 }
 0x2ae   :  { %1804 = vmatpush.msrb.mxu2 %v3109_v16  ;;  %1828 = vmatpush.msrb.mxu3 %v2974_v41 }
 0x2af   :  { %1847 = vmatpush.msra.mxu0 %v3192_v25  ;;  %1870 = vmatpush.msra.mxu1 %v3195_v43 }
 0x2b0   :  { %2109 = vmatmul.msk.f32.gmra.mxu2 %vm635_vm3, %v3199_v56  ;;  %2111 = vmatmul.msk.f32.gmra.mxu3 %vm635_vm3, %v3199_v56 }
 0x2b1   :  { %1805 = vmatpush.msrb.mxu2 %v2968_v42  ;;  %1829 = vmatpush.msrb.mxu3 %v3092_v20 }
 0x2b2   :  { %1848 = vmatpush.msra.mxu0 %v2992_v26  ;;  %1871 = vmatpush.msra.mxu1 %v2989_v39 }
 0x2b3   :  { %1806 = vmatpush.msrb.mxu2 %v3099_v21  ;;  %1830 = vmatpush.msrb.mxu3 %v3109_v16 }
 0x2b4   :  { %1849 = vmatpush.msra.mxu0 %v3134_v29  ;;  %1872 = vmatpush.msra.mxu1 %v3178_v5 }
 0x2b5   :  { %1807 = vmatpush.msrb.mxu2 %v3106_v57  ;;  %1831 = vmatpush.msrb.mxu3 %v2968_v42  ;;  %v1573_v42 = vsel %vm584_vm1, %v2306_v0, %v2307_v2 }
 0x2b6   :  { %1850 = vmatpush.msra.mxu0 %v3149_v61  ;;  %1873 = vmatpush.msra.mxu1 %v3192_v25 }
 0x2b7   :  { %1915 = vmatpush.msra.mxu3 %v3219_v8  ;;  %2113 = vmatmul.msk.f32.gmra.mxu0 %vm635_vm3, %v3199_v56 }
 0x2b8   :  { %2115 = vmatmul.msk.f32.gmra.mxu1 %vm635_vm3, %v3199_v56  ;;  %1808 = vmatpush.msrb.mxu2 %v2965_v33  ;;  %v1507_v33 = vsel %vm517_vm2, %v2311_v30, %v2312_v9 }
 0x2b9   :  { %1851 = vmatpush.msra.mxu0 %v2976_v31  ;;  %1874 = vmatpush.msra.mxu1 %v2992_v26 }
 0x2ba   :  { %1892 = vmatpush.msra.mxu2 %v1573_v42  ;;  %1916 = vmatpush.msra.mxu3 %v1508_v10 }
 0x2bb   :  { %2116 = vmatmul.msk.f32.vlgmr.msrb.gmra.mxu2 %vm635_vm3, %v3157_v19  ;;  %2118 = vmatmul.msk.f32.vlgmr.msrb.gmra.mxu3 %vm635_vm3, %v3157_v19 }
 0x2bc   :  { %1852 = vmatpush.msra.mxu0 %v3146_v24  ;;  %1875 = vmatpush.msra.mxu1 %v3134_v29 }
 0x2bd   :  { %1893 = vmatpush.msra.mxu2 %v1507_v33  ;;  %1917 = vmatpush.msra.mxu3 %v2987_v38 }
 0x2be   :  { %1853 = vmatpush.msra.mxu0 %v3164_v53  ;;  %1876 = vmatpush.msra.mxu1 %v3149_v61 }
 0x2bf   :  { %1894 = vmatpush.msra.mxu2 %v2985_v37  ;;  %1918 = vmatpush.msra.mxu3 %v1573_v42 }
 0x2c0   :  { %1854 = vmatpush.msra.mxu0 %v2974_v41  ;;  %1877 = vmatpush.msra.mxu1 %v2976_v31  ;;  %v1594_v41 = vsel %vm517_vm2, %v1492_v27, %v2321_v18  ;;  %v1603_v31 = vsel %vm517_vm2, %v2321_v18, %v2322_v14 }
 0x2c1   :  { %1895 = vmatpush.msra.mxu2 %v3181_v6  ;;  %1919 = vmatpush.msra.mxu3 %v1507_v33 }
 0x2c2   :  { %1938 = vmatpush.msrb.mxu0 %v1598_v35  ;;  %1961 = vmatpush.msrb.mxu1 %v1607_v32 }
 0x2c3   :  { %2120 = vmatmul.msk.f32.vlgmr.msra.gmra.mxu0 %vm635_vm3, %v3157_v19  ;;  %2122 = vmatmul.msk.f32.vlgmr.msra.gmra.mxu1 %vm635_vm3, %v3157_v19 }
 0x2c4   :  { %1896 = vmatpush.msra.mxu2 %v3195_v43  ;;  %1920 = vmatpush.msra.mxu3 %v2985_v37 }
 0x2c5   :  { %1939 = vmatpush.msrb.mxu0 %v1594_v41  ;;  %1962 = vmatpush.msrb.mxu1 %v1603_v31 }
 0x2c6   :  { %2117 = vmatmul.msk.f32.gmra.mxu2 %vm635_vm3, %v3199_v56  ;;  %2119 = vmatmul.msk.f32.gmra.mxu3 %vm635_vm3, %v3199_v56 }
 0x2c7   :  { %1897 = vmatpush.msra.mxu2 %v2989_v39  ;;  %1921 = vmatpush.msra.mxu3 %v3181_v6 }
 0x2c8   :  { %1940 = vmatpush.msrb.mxu0 %v3003_v48  ;;  %1963 = vmatpush.msrb.mxu1 %v3001_v46 }
 0x2c9   :  { %1898 = vmatpush.msra.mxu2 %v3178_v5  ;;  %1922 = vmatpush.msra.mxu3 %v3195_v43 }
 0x2ca   :  { %1941 = vmatpush.msrb.mxu0 %v3219_v8  ;;  %1964 = vmatpush.msrb.mxu1 %v1598_v35 }
 0x2cb   :  { %1899 = vmatpush.msra.mxu2 %v3192_v25  ;;  %1923 = vmatpush.msra.mxu3 %v2989_v39 }
 0x2cc   :  { %1942 = vmatpush.msrb.mxu0 %v1508_v10  ;;  %1965 = vmatpush.msrb.mxu1 %v1594_v41 }
 0x2cd   :  { %2121 = vmatmul.msk.f32.gmra.mxu0 %vm635_vm3, %v3199_v56  ;;  %2123 = vmatmul.msk.f32.gmra.mxu1 %vm635_vm3, %v3199_v56 }
 0x2ce   :  { %1900 = vmatpush.msra.mxu2 %v2992_v26  ;;  %1943 = vmatpush.msrb.mxu0 %v2987_v38 }
 0x2cf   :  { %1966 = vmatpush.msrb.mxu1 %v3003_v48  ;;  %2124 = vmatmul.msk.f32.vlgmr.msra.gmra.mxu2 %vm635_vm3, %v3157_v19 }
 0x2d0   :  { %2126 = vmatmul.msk.f32.vlgmr.msra.gmra.mxu3 %vm635_vm3, %v3157_v19  ;;  %1944 = vmatpush.msrb.mxu0 %v1573_v42 }
 0x2d1   :  { %1967 = vmatpush.msrb.mxu1 %v3219_v8 }
 0x2d2   :  { %1945 = vmatpush.msrb.mxu0 %v1507_v33 }
 0x2d3   :  { %1968 = vmatpush.msrb.mxu1 %v1508_v10 }
 0x2d4   :  { %1946 = vmatpush.msrb.mxu0 %v2985_v37 }
 0x2d5   :  { %1969 = vmatpush.msrb.mxu1 %v2987_v38  ;;  %2128 = vmatmul.msk.f32.vlgmr.msrb.gmra.mxu0 %vm635_vm3, %v3157_v19 }
 0x2d6   :  { %2130 = vmatmul.msk.f32.vlgmr.msrb.gmra.mxu1 %vm635_vm3, %v3157_v19 }
 0x2d7   :  { %2125 = vmatmul.msk.f32.gmra.mxu2 %vm635_vm3, %v3199_v56 }
 0x2d8   :  { %2127 = vmatmul.msk.f32.gmra.mxu3 %vm635_vm3, %v3199_v56 }
 0x2dd   :  { %2129 = vmatmul.msk.f32.gmra.mxu0 %vm635_vm3, %v3199_v56 }
 0x2de   :  { %2131 = vmatmul.msk.f32.gmra.mxu1 %vm635_vm3, %v3199_v56 }
 0x314   :  { %v1626_v37 = vpop.f32.mrf.mxu2  ;;  %v1649_v38 = vpop.f32.mrf.mxu3 }
 0x315   :  { %1978 = vst [vmem:[#allocation8 + $0x100] sm:$0xff] %v1626_v37 }
 0x316   :  { %1979 = vst [vmem:[#allocation8 + $0x108] sm:$0xff] %v1649_v38  ;;  %v1672_v39 = vpop.f32.mrf.mxu0  ;;  %v1695_v26 = vpop.f32.mrf.mxu1 }
 0x317   :  { %1980 = vst [vmem:[#allocation8 + $0x110] sm:$0xff] %v1672_v39 }
 0x318   :  { %1981 = vst [vmem:[#allocation8 + $0x118] sm:$0xff] %v1695_v26 }
 0x31f   :  { %v1629_v46 = vpop.f32.mrf.mxu2  ;;  %v1652_v48 = vpop.f32.mrf.mxu3 }
 0x320   :  { %1994 = vst [vmem:[#allocation8 + $0x180] sm:$0xff] %v1629_v46  ;;  %v1675_v47 = vpop.f32.mrf.mxu0  ;;  %v1698_v28 = vpop.f32.mrf.mxu1 }
 0x321   :  { %1995 = vst [vmem:[#allocation8 + $0x188] sm:$0xff] %v1652_v48 }
 0x322   :  { %1996 = vst [vmem:[#allocation8 + $0x190] sm:$0xff] %v1675_v47 }
 0x323   :  { %1997 = vst [vmem:[#allocation8 + $0x198] sm:$0xff] %v1698_v28 }
 0x329   :  { %v1718_v36 = vpop.f32.mrf.mxu2  ;;  %v1741_v44 = vpop.f32.mrf.mxu3 }
 0x32a   :  { %1982 = vst [vmem:[#allocation8 + $0x120] sm:$0xff] %v1718_v36  ;;  %v1764_v45 = vpop.f32.mrf.mxu0  ;;  %v1787_v49 = vpop.f32.mrf.mxu1 }
 0x32b   :  { %1983 = vst [vmem:[#allocation8 + $0x128] sm:$0xff] %v1741_v44 }
 0x32c   :  { %1984 = vst [vmem:[#allocation8 + $0x130] sm:$0xff] %v1764_v45 }
 0x32d   :  { %1985 = vst [vmem:[#allocation8 + $0x138] sm:$0xff] %v1787_v49 }
 0x333   :  { %v1721_v15 = vpop.f32.mrf.mxu2  ;;  %v1744_v50 = vpop.f32.mrf.mxu3 }
 0x334   :  { %1998 = vst [vmem:[#allocation8 + $0x1a0] sm:$0xff] %v1721_v15  ;;  %v1767_v22 = vpop.f32.mrf.mxu0 }
 0x335   :  { %1999 = vst [vmem:[#allocation8 + $0x1a8] sm:$0xff] %v1744_v50  ;;  %v1790_v34 = vpop.f32.mrf.mxu1 }
 0x336   :  { %2000 = vst [vmem:[#allocation8 + $0x1b0] sm:$0xff] %v1767_v22 }
 0x337   :  { %2001 = vst [vmem:[#allocation8 + $0x1b8] sm:$0xff] %v1790_v34 }
 0x33e   :  { %v1810_v51 = vpop.f32.mrf.mxu2  ;;  %v1833_v52 = vpop.f32.mrf.mxu3 }
 0x33f   :  { %1986 = vst [vmem:[#allocation8 + $0x140] sm:$0xff] %v1810_v51 }
 0x340   :  { %1987 = vst [vmem:[#allocation8 + $0x148] sm:$0xff] %v1833_v52  ;;  %v1856_v54 = vpop.f32.mrf.mxu0  ;;  %v1879_v55 = vpop.f32.mrf.mxu1 }
 0x341   :  { %1988 = vst [vmem:[#allocation8 + $0x150] sm:$0xff] %v1856_v54 }
 0x342   :  { %1989 = vst [vmem:[#allocation8 + $0x158] sm:$0xff] %v1879_v55 }
 0x349   :  { %v1813_v20 = vpop.f32.mrf.mxu2  ;;  %v1836_v21 = vpop.f32.mrf.mxu3 }
 0x34a   :  { %2002 = vst [vmem:[#allocation8 + $0x1c0] sm:$0xff] %v1813_v20  ;;  %v1859_v57 = vpop.f32.mrf.mxu0  ;;  %v1882_v16 = vpop.f32.mrf.mxu1 }
 0x34b   :  { %2003 = vst [vmem:[#allocation8 + $0x1c8] sm:$0xff] %v1836_v21 }
 0x34c   :  { %2004 = vst [vmem:[#allocation8 + $0x1d0] sm:$0xff] %v1859_v57 }
 0x34d   :  { %2005 = vst [vmem:[#allocation8 + $0x1d8] sm:$0xff] %v1882_v16 }
 0x352   :  { %v1902_v17 = vpop.f32.mrf.mxu2  ;;  %v1948_v58 = vpop.f32.mrf.mxu0 }
 0x353   :  { %1990 = vst [vmem:[#allocation8 + $0x160] sm:$0xff] %v1902_v17  ;;  %v1925_v59 = vpop.f32.mrf.mxu3  ;;  %v1971_v40 = vpop.f32.mrf.mxu1 }
 0x354   :  { %1991 = vst [vmem:[#allocation8 + $0x168] sm:$0xff] %v1925_v59 }
 0x355   :  { %1992 = vst [vmem:[#allocation8 + $0x170] sm:$0xff] %v1948_v58 }
 0x356   :  { %1993 = vst [vmem:[#allocation8 + $0x178] sm:$0xff] %v1971_v40 }
 0x35a   :  { %v1905_v60 = vpop.f32.mrf.mxu2  ;;  %v1951_v29 = vpop.f32.mrf.mxu0 }
 0x35b   :  { %2006 = vst [vmem:[#allocation8 + $0x1e0] sm:$0xff] %v1905_v60  ;;  %v1928_v3 = vpop.f32.mrf.mxu3  ;;  %v1974_v24 = vpop.f32.mrf.mxu1 }
 0x35c   :  { %2007 = vst [vmem:[#allocation8 + $0x1e8] sm:$0xff] %v1928_v3 }
 0x35d   :  { %2008 = vst [vmem:[#allocation8 + $0x1f0] sm:$0xff] %v1951_v29 }
 0x35e   :  { %2009 = vst [vmem:[#allocation8 + $0x1f8] sm:$0xff] %v1974_v24 }
 0x35f   :  { %2022 = dma.vmem_to_hbm [thread:$0]  %s2015_s4, 8192, %s2017_s7, [#allocation4], %s2437_s8, %s2437_s8, %s2432_s28  }
 0x360   :  { %2425 = dma.done.wait [#allocation4], 8192  }
 0x361   :  { %2426 = vsyncadd [#allocation4], 4294959104 }
 0x362   :  { %2027 = vsyncpa [#allocation3], 1 }
 0x363   :  { %2028 = vsyncpa [#allocation6], 1 }
 0x364   :  { %2029 = vsyncpa [#allocation4], 1 }

</bundles_post_ra>
